<compile_context>
chip_gen: v5e
topology: v5e:2x2
jax: 0.10.0
libtpu: 0.0.40
codegen_flags: <defaults>
</compile_context>

<pallas_src>
import functools
import math

import jax
import jax.numpy as jnp
from jax import lax
from jax.experimental import pallas as pl
from jax.experimental.pallas import tpu as pltpu

NUM_GROUPS = 32
GN_EPS = 1e-6
CHANNELS = [128, 128, 128, 256, 256, 512]
ATTN_RESOLUTIONS = [16]
NUM_RES_BLOCKS = 2
START_RESOLUTION = 256

ACT_DTYPE = jnp.bfloat16   # HBM storage / MXU operand dtype
ACC_DTYPE = jnp.float32    # accumulators / statistics / softmax


# ------------------------------ small helpers -------------------------------

def _nbytes(shape, dtype):
    n = 1
    for d in shape:
        n *= int(d)
    return n * jnp.dtype(dtype).itemsize


def _compiler_params(sems, est_block_bytes):
    # Request only what the blocks need (plus double-buffer headroom); never
    # the full physical VMEM.  Capped at 48 MiB so it is safe on v7x (64 MiB
    # physical); v5e/v6e could go higher for bigger tiles at real resolutions.
    limit = max(int(2 * est_block_bytes) + (8 << 20), 16 << 20)
    limit = min(limit, 48 << 20)
    return pltpu.CompilerParams(dimension_semantics=sems,
                                vmem_limit_bytes=limit)


def _pick_row_tile(ho, wo, cin, cout):
    """Output-row tile: aim for ~512 tokens/step (256 for 512-wide channels)."""
    tokens = 256 if max(cin, cout) >= 512 else 512
    tr = max(1, tokens // max(1, wo))
    tr = 1 << (tr.bit_length() - 1)      # floor to power of two
    tr = min(tr, ho)
    while ho % tr:                       # must divide Ho (no OOB halo reads)
        tr //= 2
    return max(tr, 1)


def _pick_token_tile(p, c):
    tp = 256 if c >= 512 else 1024
    tp = min(tp, p)
    while p % tp:
        tp //= 2
    return max(tp, 1)


# ----------------------------- Pallas kernels ------------------------------

def _conv_kernel(*refs, n_src, taps, has_residual):
    """Direct conv as K shifted matmuls, tiled over output rows.

    refs = src_refs[0..n_src-1], w_ref (K,Cin,Cout), b_ref (1,Cout),
           [res_ref (1,TR,Wo,Cout)], o_ref (1,TR,Wo,Cout), acc_ref (Wo,Cout) f32
    taps = static tuple of (src_index, row_shift, col_shift), aligned with w[K].
    Sources are full (padded) images resident in VMEM for the current batch.
    """
    srcs = refs[:n_src]
    w_ref = refs[n_src]
    b_ref = refs[n_src + 1]
    nxt = n_src + 2
    res_ref = refs[nxt] if has_residual else None
    nxt += 1 if has_residual else 0
    o_ref = refs[nxt]
    acc_ref = refs[nxt + 1]

    tr, wo = o_ref.shape[1], o_ref.shape[2]
    r0 = pl.program_id(1) * tr           # global output-row offset of this tile

    def row_body(r, carry):
        acc_ref[...] = jnp.zeros_like(acc_ref)
        for k, (si, dr, dc) in enumerate(taps):
            win = srcs[si][0, r0 + r + dr, pl.ds(dc, wo), :]   # (Wo, Cin) bf16
            acc_ref[...] += jnp.dot(win, w_ref[k],
                                    preferred_element_type=jnp.float32)
        val = acc_ref[...] + b_ref[...]
        if has_residual:                                        # fused skip add
            val = val + res_ref[0, r].astype(jnp.float32)
        o_ref[0, r] = val.astype(o_ref.dtype)
        return carry

    if tr * len(taps) <= 72:             # small tiles: fully unroll
        for r in range(tr):
            row_body(r, 0)
    else:
        lax.fori_loop(0, tr, row_body, 0)


def _gn_stats_kernel(x_ref, o_ref):
    """Partial per-channel sum / sum-of-squares, accumulated over token tiles."""
    @pl.when(pl.program_id(1) == 0)
    def _():
        o_ref[...] = jnp.zeros_like(o_ref)
    x = x_ref[0].astype(jnp.float32)                    # (TP, C)
    s1 = jnp.sum(x, axis=0, keepdims=True)              # (1, C)
    s2 = jnp.sum(x * x, axis=0, keepdims=True)          # (1, C)
    o_ref[...] += jnp.concatenate([s1, s2], axis=0)[None]   # (1, 2, C)


def _gn_apply_kernel(x_ref, a_ref, b_ref, o_ref, *, apply_swish):
    """y = x * a_c + b_c (per batch/channel affine from GN stats) [+ Swish]."""
    x = x_ref[0].astype(jnp.float32)                    # (TP, C)
    y = x * a_ref[...] + b_ref[...]
    if apply_swish:
        y = y * jax.nn.sigmoid(y)
    o_ref[0] = y.astype(o_ref.dtype)


def _attn_kernel(q_ref, k_ref, v_ref, r_ref, o_ref, *, scale):
    """NonLocalBlock core: x + softmax(q k^T * c^-0.5) @ v  (residual fused).

    TODO(synk): the full (P, P) score matrix is materialized; fine at the
    built-for resolutions but should become a flash-style tiled softmax if
    ATTN_RESOLUTIONS / input size grows.
    """
    q = q_ref[0].astype(jnp.float32)     # (P, C)
    k = k_ref[0].astype(jnp.float32)     # (P, C)
    s = lax.dot_general(q, k, (((1,), (1,)), ((), ())),
                        preferred_element_type=jnp.float32) * scale   # (P, P)
    s = s - jnp.max(s, axis=-1, keepdims=True)
    e = jnp.exp(s)
    p = e * pl.reciprocal(jnp.sum(e, axis=-1, keepdims=True), approx=True)
    att = jnp.dot(p.astype(v_ref.dtype), v_ref[0],
                  preferred_element_type=jnp.float32)                 # (P, C)
    o_ref[0] = (att + r_ref[0].astype(jnp.float32)).astype(o_ref.dtype)


# ------------------------------ op wrappers --------------------------------

def _conv_pallas(sources, taps, wk, bias, residual, ho, wo, cout):
    batch = sources[0].shape[0]
    k_taps, cin, _ = wk.shape
    tr = _pick_row_tile(ho, wo, cin, cout)
    nt = ho // tr

    in_specs, args = [], []
    for s in sources:   # resident per batch element (constant over row tiles)
        in_specs.append(pl.BlockSpec((1,) + tuple(s.shape[1:]),
                                     lambda b, t: (b, 0, 0, 0)))
        args.append(s)
    in_specs.append(pl.BlockSpec(tuple(wk.shape), lambda b, t: (0, 0, 0)))
    args.append(wk)
    in_specs.append(pl.BlockSpec((1, cout), lambda b, t: (0, 0)))
    args.append(bias.reshape(1, cout).astype(jnp.float32))
    has_res = residual is not None
    if has_res:
        in_specs.append(pl.BlockSpec((1, tr, wo, cout),
                                     lambda b, t: (b, t, 0, 0)))
        args.append(residual)
    out_specs = pl.BlockSpec((1, tr, wo, cout), lambda b, t: (b, t, 0, 0))

    est = sum(_nbytes(s.shape[1:], s.dtype) for s in sources)
    est += _nbytes(wk.shape, wk.dtype) + _nbytes((1, cout), jnp.float32)
    est += (2 + int(has_res)) * _nbytes((tr, wo, cout), ACT_DTYPE)
    est += _nbytes((wo, cout), jnp.float32)

    return pl.pallas_call(
        functools.partial(_conv_kernel, n_src=len(sources), taps=tuple(taps),
                          has_residual=has_res),
        out_shape=jax.ShapeDtypeStruct((batch, ho, wo, cout), ACT_DTYPE),
        grid=(batch, nt),
        in_specs=in_specs,
        out_specs=out_specs,
        scratch_shapes=[pltpu.VMEM((wo, cout), jnp.float32)],
        compiler_params=_compiler_params(("parallel", "parallel"), est),
    )(*args)


def conv2d(x, w, b, *, stride=1, pad=((0, 0), (0, 0)), residual=None):
    """x: (B,H,W,Cin) bf16 NHWC, w: (kh,kw,Cin,Cout) bf16, b: (Cout,) f32."""
    B, H, W, Cin = x.shape
    kh, kw, _, Cout = w.shape

    if kh == 1 and kw == 1:                       # 1x1 conv (channel_up, q/k/v)
        ho, wo = H, W
        sources = [x]
        taps = [(0, 0, 0)]
        wk = w.reshape(1, Cin, Cout)
    elif stride == 1:                             # 3x3 stride-1, zero pad
        xp = jnp.pad(x, ((0, 0), pad[0], pad[1], (0, 0)))
        hp, wp = xp.shape[1], xp.shape[2]
        ho, wo = hp - kh + 1, wp - kw + 1
        if Cin < 16:
            # conv_in: fold taps + channels into one K*Cin=27 -> 32 contraction
            cols = [xp[:, dy:dy + ho, dx:dx + wo, :]
                    for dy in range(kh) for dx in range(kw)]
            pat = jnp.concatenate(cols, axis=-1)          # (B, Ho, Wo, K*Cin)
            kc = kh * kw * Cin
            pad_c = (-kc) % 32
            if pad_c:
                pat = jnp.pad(pat, ((0, 0), (0, 0), (0, 0), (0, pad_c)))
            wk = w.reshape(kc, Cout)
            if pad_c:
                wk = jnp.pad(wk, ((0, pad_c), (0, 0)))
            wk = wk.reshape(1, kc + pad_c, Cout)
            sources = [pat]
            taps = [(0, 0, 0)]
        else:
            sources = [xp]
            taps = [(0, dy, dx) for dy in range(kh) for dx in range(kw)]
            wk = w.reshape(kh * kw, Cin, Cout)
    else:                                         # 3x3 stride-2 DownSample
        assert stride == 2 and kh == 3 and kw == 3
        assert H % 2 == 0 and W % 2 == 0
        xp = jnp.pad(x, ((0, 0), pad[0], pad[1], (0, 0)))
        hp, wp = xp.shape[1], xp.shape[2]
        ho, wo = (hp - kh) // 2 + 1, (wp - kw) // 2 + 1
        # Phase decomposition: 1x extra HBM traffic instead of 9x im2col.
        sources = [xp[:, py::2, px::2, :] for py in (0, 1) for px in (0, 1)]
        taps = [(2 * (dy % 2) + (dx % 2), dy // 2, dx // 2)
                for dy in range(kh) for dx in range(kw)]
        wk = w.reshape(9, Cin, Cout)

    return _conv_pallas(sources, taps, wk, b, residual, ho, wo, Cout)


def group_norm(x, gamma, beta, *, apply_swish):
    """Two-pass tiled GroupNorm (32 groups) with optional fused Swish."""
    B, H, W, C = x.shape
    G = NUM_GROUPS
    cg = C // G
    P = H * W
    xt = x.reshape(B, P, C)
    TP = _pick_token_tile(P, C)
    nt = P // TP

    est = 2 * _nbytes((TP, C), ACT_DTYPE) + _nbytes((2, C), jnp.float32)
    stats = pl.pallas_call(
        _gn_stats_kernel,
        out_shape=jax.ShapeDtypeStruct((B, 2, C), jnp.float32),
        grid=(B, nt),
        in_specs=[pl.BlockSpec((1, TP, C), lambda b, t: (b, t, 0))],
        out_specs=pl.BlockSpec((1, 2, C), lambda b, t: (b, 0, 0)),
        compiler_params=_compiler_params(("parallel", "arbitrary"), est),
    )(xt)

    # Tiny JAX glue (B*C elems): fold group stats + affine into per-channel a,b.
    # NOTE: E[x^2]-E[x]^2 in f32; clamp to >=0 to guard cancellation.
    s1 = stats[:, 0, :].reshape(B, G, cg).sum(axis=-1)
    s2 = stats[:, 1, :].reshape(B, G, cg).sum(axis=-1)
    n = float(P * cg)
    mean = s1 / n
    var = jnp.maximum(s2 / n - mean * mean, 0.0)
    rstd = lax.rsqrt(var + GN_EPS)
    scale_c = jnp.repeat(rstd, cg, axis=1) * gamma[None, :]
    shift_c = beta[None, :] - jnp.repeat(mean, cg, axis=1) * scale_c

    est = 2 * _nbytes((TP, C), ACT_DTYPE) + 2 * _nbytes((1, C), jnp.float32)
    out = pl.pallas_call(
        functools.partial(_gn_apply_kernel, apply_swish=apply_swish),
        out_shape=jax.ShapeDtypeStruct((B, P, C), ACT_DTYPE),
        grid=(B, nt),
        in_specs=[pl.BlockSpec((1, TP, C), lambda b, t: (b, t, 0)),
                  pl.BlockSpec((1, C), lambda b, t: (b, 0)),
                  pl.BlockSpec((1, C), lambda b, t: (b, 0))],
        out_specs=pl.BlockSpec((1, TP, C), lambda b, t: (b, t, 0)),
        compiler_params=_compiler_params(("parallel", "parallel"), est),
    )(xt, scale_c.astype(jnp.float32), shift_c.astype(jnp.float32))
    return out.reshape(B, H, W, C)


def token_attention(q, k, v, x_res, *, scale):
    B, P, C = q.shape
    est = 5 * _nbytes((P, C), ACT_DTYPE) + _nbytes((P, P), jnp.float32)
    return pl.pallas_call(
        functools.partial(_attn_kernel, scale=scale),
        out_shape=jax.ShapeDtypeStruct((B, P, C), ACT_DTYPE),
        grid=(B,),
        in_specs=[pl.BlockSpec((1, P, C), lambda b: (b, 0, 0))] * 4,
        out_specs=pl.BlockSpec((1, P, C), lambda b: (b, 0, 0)),
        compiler_params=_compiler_params(("parallel",), est),
    )(q, k, v, x_res)


# ------------------------------ blocks -------------------------------------

def residual_block(x, p):
    if p["channel_up"] is not None:
        sc = conv2d(x, p["channel_up"]["w"], p["channel_up"]["b"])
    else:
        sc = x
    h = group_norm(x, p["gn1"]["gamma"], p["gn1"]["beta"], apply_swish=True)
    h = conv2d(h, p["conv1"]["w"], p["conv1"]["b"], pad=((1, 1), (1, 1)))
    h = group_norm(h, p["gn2"]["gamma"], p["gn2"]["beta"], apply_swish=True)
    # residual add fused into the second conv's epilogue
    return conv2d(h, p["conv2"]["w"], p["conv2"]["b"], pad=((1, 1), (1, 1)),
                  residual=sc)


def non_local_block(x, p):
    B, H, W, C = x.shape
    h = group_norm(x, p["gn"]["gamma"], p["gn"]["beta"], apply_swish=False)
    q = conv2d(h, p["q"]["w"], p["q"]["b"])
    k = conv2d(h, p["k"]["w"], p["k"]["b"])
    v = conv2d(h, p["v"]["w"], p["v"]["b"])
    P = H * W
    out = token_attention(q.reshape(B, P, C), k.reshape(B, P, C),
                          v.reshape(B, P, C), x.reshape(B, P, C),
                          scale=float(C) ** -0.5)
    return out.reshape(B, H, W, C)


def down_sample_block(x, p):
    # F.pad(x, (0,1,0,1)) (right/bottom) followed by Conv2d(c, c, 3, 2, 0)
    return conv2d(x, p["w"], p["b"], stride=2, pad=((0, 1), (0, 1)))


# ------------------------------ parameters ---------------------------------

def _init_conv(key, kh, kw, cin, cout):
    fan_in = kh * kw * cin
    w = (jax.random.normal(key, (kh, kw, cin, cout), jnp.float32)
         / jnp.sqrt(fan_in)).astype(ACT_DTYPE)
    b = jnp.zeros((cout,), jnp.float32)
    return {"w": w, "b": b}


def _init_gn(c):
    return {"gamma": jnp.ones((c,), jnp.float32),
            "beta": jnp.zeros((c,), jnp.float32)}


def build_encoder_params(key, image_channels, latent_dim):
    keys = iter(jax.random.split(key, 256))
    nk = lambda: next(keys)

    def resblock_params(cin, cout):
        return {
            "gn1": _init_gn(cin),
            "conv1": _init_conv(nk(), 3, 3, cin, cout),
            "gn2": _init_gn(cout),
            "conv2": _init_conv(nk(), 3, 3, cout, cout),
            "channel_up": _init_conv(nk(), 1, 1, cin, cout) if cin != cout else None,
        }

    def nonlocal_params(c):
        # proj_out exists in the reference module but is unused in forward().
        return {
            "gn": _init_gn(c),
            "q": _init_conv(nk(), 1, 1, c, c),
            "k": _init_conv(nk(), 1, 1, c, c),
            "v": _init_conv(nk(), 1, 1, c, c),
        }

    layers = []
    channels = CHANNELS
    layers.append(("conv_in", _init_conv(nk(), 3, 3, image_channels, channels[0])))
    resolution = START_RESOLUTION
    for i in range(len(channels) - 1):
        in_c = channels[i]
        out_c = channels[i + 1]
        for _ in range(NUM_RES_BLOCKS):
            layers.append(("res", resblock_params(in_c, out_c)))
            in_c = out_c
            if resolution in ATTN_RESOLUTIONS:
                layers.append(("attn", nonlocal_params(in_c)))
        if i != len(channels) - 2:
            layers.append(("down", _init_conv(nk(), 3, 3, channels[i + 1],
                                              channels[i + 1])))
            resolution //= 2
    layers.append(("res", resblock_params(channels[-1], channels[-1])))
    layers.append(("attn", nonlocal_params(channels[-1])))
    layers.append(("res", resblock_params(channels[-1], channels[-1])))
    layers.append(("gn_swish", _init_gn(channels[-1])))  # GroupNorm + Swish fused
    layers.append(("conv_out", _init_conv(nk(), 3, 3, channels[-1], latent_dim)))
    return layers


def encoder_forward(layers, x_nchw):
    x = jnp.transpose(x_nchw, (0, 2, 3, 1)).astype(ACT_DTYPE)  # NCHW -> NHWC bf16
    for kind, p in layers:
        if kind in ("conv_in", "conv_out"):
            x = conv2d(x, p["w"], p["b"], stride=1, pad=((1, 1), (1, 1)))
        elif kind == "res":
            x = residual_block(x, p)
        elif kind == "attn":
            x = non_local_block(x, p)
        elif kind == "down":
            x = down_sample_block(x, p)
        elif kind == "gn_swish":
            x = group_norm(x, p["gamma"], p["beta"], apply_swish=True)
    return jnp.transpose(x, (0, 3, 1, 2)).astype(jnp.float32)   # NHWC -> NCHW


# --------------------------------- main -------------------------------------

if __name__ == "__main__":
    class Args:
        image_channels = 3
        latent_dim = 8

    key = jax.random.PRNGKey(0)
    pkey, xkey = jax.random.split(key)
    params = build_encoder_params(pkey, Args.image_channels, Args.latent_dim)

    # Small NCHW input (PyTorch convention): 32x32 so that the four
    # DownSampleBlocks bring spatial to 2x2 at the attention/latent stages.
    x = jax.random.normal(xkey, (2, Args.image_channels, 32, 32), jnp.float32)

    y = encoder_forward(params, x)
    y = jax.block_until_ready(y)

    assert y.shape == (2, Args.latent_dim, 2, 2), y.shape
    assert bool(jnp.all(jnp.isfinite(y)))
    print("KERNEL_OK")
</pallas_src>

<mosaic_0001>
module attributes {stable_mosaic.version = 11 : i64} {
  func.func @_conv_kernel(%arg0: i32, %arg1: i32, %arg2: memref<1x32x32x32xbf16, #tpu.memory_space<vmem>>, %arg3: memref<1x32x128xbf16, #tpu.memory_space<vmem>>, %arg4: memref<1x128xf32, #tpu.memory_space<vmem>>, %arg5: memref<1x16x32x128xbf16, #tpu.memory_space<vmem>>, %arg6: memref<32x128xf32, #tpu.memory_space<vmem>>) attributes {dimension_semantics = [#tpu.dimension_semantics<parallel>, #tpu.dimension_semantics<parallel>], iteration_bounds = array<i64: 2, 2>, scalar_prefetch = 0 : i64, scratch_operands = 1 : i64, tpu.core_type = #tpu.core_type<tc>, window_params = [{transform_indices = @transform_0, window_bounds = array<i64: 1, 32, 32, 32>}, {pipeline_mode = #tpu.pipeline_mode<synchronous>, transform_indices = @transform_1, window_bounds = array<i64: 1, 32, 128>}, {pipeline_mode = #tpu.pipeline_mode<synchronous>, transform_indices = @transform_2, window_bounds = array<i64: 1, 128>}, {transform_indices = @transform_3, window_bounds = array<i64: 1, 16, 32, 128>}]} {
    %c16_i32 = arith.constant 16 : i32
    %0 = arith.muli %arg1, %c16_i32 : i32
    %cst = arith.constant 0.000000e+00 : f32
    %1 = vector.broadcast %cst : f32 to vector<32x128xf32>
    %c0 = arith.constant 0 : index
    %c0_0 = arith.constant 0 : index
    %2 = vector.load %arg6[%c0, %c0_0] : memref<32x128xf32, #tpu.memory_space<vmem>>, vector<32x128xf32>
    tpu.vector_store %arg6[%c0, %c0_0], %1 {strides = array<i32>} : memref<32x128xf32, #tpu.memory_space<vmem>>, vector<32x128xf32>,
    %c0_i32 = arith.constant 0 : i32
    %3 = arith.addi %0, %c0_i32 : i32
    %c0_i32_1 = arith.constant 0 : i32
    %4 = arith.addi %3, %c0_i32_1 : i32
    %c0_2 = arith.constant 0 : index
    %5 = arith.index_cast %4 : i32 to index
    %c0_3 = arith.constant 0 : index
    %c0_4 = arith.constant 0 : index
    %6 = vector.load %arg2[%c0_2, %5, %c0_3, %c0_4] : memref<1x32x32x32xbf16, #tpu.memory_space<vmem>>, vector<1x1x32x32xbf16>
    %7 = vector.shape_cast %6 : vector<1x1x32x32xbf16> to vector<32x32xbf16>
    %c0_5 = arith.constant 0 : index
    %c0_6 = arith.constant 0 : index
    %8 = vector.load %arg6[%c0_5, %c0_6] : memref<32x128xf32, #tpu.memory_space<vmem>>, vector<32x128xf32>
    %c0_7 = arith.constant 0 : index
    %c0_8 = arith.constant 0 : index
    %c0_9 = arith.constant 0 : index
    %9 = vector.load %arg3[%c0_7, %c0_8, %c0_9] : memref<1x32x128xbf16, #tpu.memory_space<vmem>>, vector<1x32x128xbf16>
    %10 = vector.shape_cast %9 : vector<1x32x128xbf16> to vector<32x128xbf16>
    %cst_10 = arith.constant dense<0.000000e+00> : vector<32x128xf32>
    %11 = tpu.matmul %7, %10, %cst_10 {dimension_numbers = #tpu.dot_dimension_numbers<[1], [0], [0], [1], [0, 0, 1, 1], [], []>} : vector<32x32xbf16>, vector<32x128xbf16>, vector<32x128xf32> -> vector<32x128xf32>
    %12 = arith.addf %8, %11 : vector<32x128xf32>
    %c0_11 = arith.constant 0 : index
    %c0_12 = arith.constant 0 : index
    %13 = vector.load %arg6[%c0_11, %c0_12] : memref<32x128xf32, #tpu.memory_space<vmem>>, vector<32x128xf32>
    tpu.vector_store %arg6[%c0_11, %c0_12], %12 {strides = array<i32>} : memref<32x128xf32, #tpu.memory_space<vmem>>, vector<32x128xf32>,
    %c0_13 = arith.constant 0 : index
    %c0_14 = arith.constant 0 : index
    %14 = vector.load %arg6[%c0_13, %c0_14] : memref<32x128xf32, #tpu.memory_space<vmem>>, vector<32x128xf32>
    %c0_15 = arith.constant 0 : index
    %c0_16 = arith.constant 0 : index
    %15 = vector.load %arg4[%c0_15, %c0_16] : memref<1x128xf32, #tpu.memory_space<vmem>>, vector<1x128xf32>
    %16 = vector.broadcast %15 : vector<1x128xf32> to vector<32x128xf32>
    %17 = arith.addf %14, %16 : vector<32x128xf32>
    %18 = arith.truncf %17 : vector<32x128xf32> to vector<32x128xbf16>
    %c0_17 = arith.constant 0 : index
    %c0_18 = arith.constant 0 : index
    %c0_19 = arith.constant 0 : index
    %c0_20 = arith.constant 0 : index
    %19 = vector.load %arg5[%c0_17, %c0_18, %c0_19, %c0_20] : memref<1x16x32x128xbf16, #tpu.memory_space<vmem>>, vector<1x1x32x128xbf16>
    %20 = vector.shape_cast %19 : vector<1x1x32x128xbf16> to vector<32x128xbf16>
    %21 = vector.shape_cast %18 : vector<32x128xbf16> to vector<1x1x32x128xbf16>
    tpu.vector_store %arg5[%c0_17, %c0_18, %c0_19, %c0_20], %21 {strides = array<i32>} : memref<1x16x32x128xbf16, #tpu.memory_space<vmem>>, vector<1x1x32x128xbf16>,
    %cst_21 = arith.constant 0.000000e+00 : f32
    %22 = vector.broadcast %cst_21 : f32 to vector<32x128xf32>
    %c0_22 = arith.constant 0 : index
    %c0_23 = arith.constant 0 : index
    %23 = vector.load %arg6[%c0_22, %c0_23] : memref<32x128xf32, #tpu.memory_space<vmem>>, vector<32x128xf32>
    tpu.vector_store %arg6[%c0_22, %c0_23], %22 {strides = array<i32>} : memref<32x128xf32, #tpu.memory_space<vmem>>, vector<32x128xf32>,
    %c1_i32 = arith.constant 1 : i32
    %24 = arith.addi %0, %c1_i32 : i32
    %c0_i32_24 = arith.constant 0 : i32
    %25 = arith.addi %24, %c0_i32_24 : i32
    %c0_25 = arith.constant 0 : index
    %26 = arith.index_cast %25 : i32 to index
    %c0_26 = arith.constant 0 : index
    %c0_27 = arith.constant 0 : index
    %27 = vector.load %arg2[%c0_25, %26, %c0_26, %c0_27] : memref<1x32x32x32xbf16, #tpu.memory_space<vmem>>, vector<1x1x32x32xbf16>
    %28 = vector.shape_cast %27 : vector<1x1x32x32xbf16> to vector<32x32xbf16>
    %c0_28 = arith.constant 0 : index
    %c0_29 = arith.constant 0 : index
    %29 = vector.load %arg6[%c0_28, %c0_29] : memref<32x128xf32, #tpu.memory_space<vmem>>, vector<32x128xf32>
    %c0_30 = arith.constant 0 : index
    %c0_31 = arith.constant 0 : index
    %c0_32 = arith.constant 0 : index
    %30 = vector.load %arg3[%c0_30, %c0_31, %c0_32] : memref<1x32x128xbf16, #tpu.memory_space<vmem>>, vector<1x32x128xbf16>
    %31 = vector.shape_cast %30 : vector<1x32x128xbf16> to vector<32x128xbf16>
    %cst_33 = arith.constant dense<0.000000e+00> : vector<32x128xf32>
    %32 = tpu.matmul %28, %31, %cst_33 {dimension_numbers = #tpu.dot_dimension_numbers<[1], [0], [0], [1], [0, 0, 1, 1], [], []>} : vector<32x32xbf16>, vector<32x128xbf16>, vector<32x128xf32> -> vector<32x128xf32>
    %33 = arith.addf %29, %32 : vector<32x128xf32>
    %c0_34 = arith.constant 0 : index
    %c0_35 = arith.constant 0 : index
    %34 = vector.load %arg6[%c0_34, %c0_35] : memref<32x128xf32, #tpu.memory_space<vmem>>, vector<32x128xf32>
    tpu.vector_store %arg6[%c0_34, %c0_35], %33 {strides = array<i32>} : memref<32x128xf32, #tpu.memory_space<vmem>>, vector<32x128xf32>,
    %c0_36 = arith.constant 0 : index
    %c0_37 = arith.constant 0 : index
    %35 = vector.load %arg6[%c0_36, %c0_37] : memref<32x128xf32, #tpu.memory_space<vmem>>, vector<32x128xf32>
    %c0_38 = arith.constant 0 : index
    %c0_39 = arith.constant 0 : index
    %36 = vector.load %arg4[%c0_38, %c0_39] : memref<1x128xf32, #tpu.memory_space<vmem>>, vector<1x128xf32>
    %37 = vector.broadcast %36 : vector<1x128xf32> to vector<32x128xf32>
    %38 = arith.addf %35, %37 : vector<32x128xf32>
    %39 = arith.truncf %38 : vector<32x128xf32> to vector<32x128xbf16>
    %c0_40 = arith.constant 0 : index
    %c1 = arith.constant 1 : index
    %c0_41 = arith.constant 0 : index
    %c0_42 = arith.constant 0 : index
    %40 = vector.load %arg5[%c0_40, %c1, %c0_41, %c0_42] : memref<1x16x32x128xbf16, #tpu.memory_space<vmem>>, vector<1x1x32x128xbf16>
    %41 = vector.shape_cast %40 : vector<1x1x32x128xbf16> to vector<32x128xbf16>
    %42 = vector.shape_cast %39 : vector<32x128xbf16> to vector<1x1x32x128xbf16>
    tpu.vector_store %arg5[%c0_40, %c1, %c0_41, %c0_42], %42 {strides = array<i32>} : memref<1x16x32x128xbf16, #tpu.memory_space<vmem>>, vector<1x1x32x128xbf16>,
    %cst_43 = arith.constant 0.000000e+00 : f32
    %43 = vector.broadcast %cst_43 : f32 to vector<32x128xf32>
    %c0_44 = arith.constant 0 : index
    %c0_45 = arith.constant 0 : index
    %44 = vector.load %arg6[%c0_44, %c0_45] : memref<32x128xf32, #tpu.memory_space<vmem>>, vector<32x128xf32>
    tpu.vector_store %arg6[%c0_44, %c0_45], %43 {strides = array<i32>} : memref<32x128xf32, #tpu.memory_space<vmem>>, vector<32x128xf32>,
    %c2_i32 = arith.constant 2 : i32
    %45 = arith.addi %0, %c2_i32 : i32
    %c0_i32_46 = arith.constant 0 : i32
    %46 = arith.addi %45, %c0_i32_46 : i32
    %c0_47 = arith.constant 0 : index
    %47 = arith.index_cast %46 : i32 to index
    %c0_48 = arith.constant 0 : index
    %c0_49 = arith.constant 0 : index
    %48 = vector.load %arg2[%c0_47, %47, %c0_48, %c0_49] : memref<1x32x32x32xbf16, #tpu.memory_space<vmem>>, vector<1x1x32x32xbf16>
    %49 = vector.shape_cast %48 : vector<1x1x32x32xbf16> to vector<32x32xbf16>
    %c0_50 = arith.constant 0 : index
    %c0_51 = arith.constant 0 : index
    %50 = vector.load %arg6[%c0_50, %c0_51] : memref<32x128xf32, #tpu.memory_space<vmem>>, vector<32x128xf32>
    %c0_52 = arith.constant 0 : index
    %c0_53 = arith.constant 0 : index
    %c0_54 = arith.constant 0 : index
    %51 = vector.load %arg3[%c0_52, %c0_53, %c0_54] : memref<1x32x128xbf16, #tpu.memory_space<vmem>>, vector<1x32x128xbf16>
    %52 = vector.shape_cast %51 : vector<1x32x128xbf16> to vector<32x128xbf16>
    %cst_55 = arith.constant dense<0.000000e+00> : vector<32x128xf32>
    %53 = tpu.matmul %49, %52, %cst_55 {dimension_numbers = #tpu.dot_dimension_numbers<[1], [0], [0], [1], [0, 0, 1, 1], [], []>} : vector<32x32xbf16>, vector<32x128xbf16>, vector<32x128xf32> -> vector<32x128xf32>
    %54 = arith.addf %50, %53 : vector<32x128xf32>
    %c0_56 = arith.constant 0 : index
    %c0_57 = arith.constant 0 : index
    %55 = vector.load %arg6[%c0_56, %c0_57] : memref<32x128xf32, #tpu.memory_space<vmem>>, vector<32x128xf32>
    tpu.vector_store %arg6[%c0_56, %c0_57], %54 {strides = array<i32>} : memref<32x128xf32, #tpu.memory_space<vmem>>, vector<32x128xf32>,
    %c0_58 = arith.constant 0 : index
    %c0_59 = arith.constant 0 : index
    %56 = vector.load %arg6[%c0_58, %c0_59] : memref<32x128xf32, #tpu.memory_space<vmem>>, vector<32x128xf32>
    %c0_60 = arith.constant 0 : index
    %c0_61 = arith.constant 0 : index
    %57 = vector.load %arg4[%c0_60, %c0_61] : memref<1x128xf32, #tpu.memory_space<vmem>>, vector<1x128xf32>
    %58 = vector.broadcast %57 : vector<1x128xf32> to vector<32x128xf32>
    %59 = arith.addf %56, %58 : vector<32x128xf32>
    %60 = arith.truncf %59 : vector<32x128xf32> to vector<32x128xbf16>
    %c0_62 = arith.constant 0 : index
    %c2 = arith.constant 2 : index
    %c0_63 = arith.constant 0 : index
    %c0_64 = arith.constant 0 : index
    %61 = vector.load %arg5[%c0_62, %c2, %c0_63, %c0_64] : memref<1x16x32x128xbf16, #tpu.memory_space<vmem>>, vector<1x1x32x128xbf16>
    %62 = vector.shape_cast %61 : vector<1x1x32x128xbf16> to vector<32x128xbf16>
    %63 = vector.shape_cast %60 : vector<32x128xbf16> to vector<1x1x32x128xbf16>
    tpu.vector_store %arg5[%c0_62, %c2, %c0_63, %c0_64], %63 {strides = array<i32>} : memref<1x16x32x128xbf16, #tpu.memory_space<vmem>>, vector<1x1x32x128xbf16>,
    %cst_65 = arith.constant 0.000000e+00 : f32
    %64 = vector.broadcast %cst_65 : f32 to vector<32x128xf32>
    %c0_66 = arith.constant 0 : index
    %c0_67 = arith.constant 0 : index
    %65 = vector.load %arg6[%c0_66, %c0_67] : memref<32x128xf32, #tpu.memory_space<vmem>>, vector<32x128xf32>
    tpu.vector_store %arg6[%c0_66, %c0_67], %64 {strides = array<i32>} : memref<32x128xf32, #tpu.memory_space<vmem>>, vector<32x128xf32>,
    %c3_i32 = arith.constant 3 : i32
    %66 = arith.addi %0, %c3_i32 : i32
    %c0_i32_68 = arith.constant 0 : i32
    %67 = arith.addi %66, %c0_i32_68 : i32
    %c0_69 = arith.constant 0 : index
    %68 = arith.index_cast %67 : i32 to index
    %c0_70 = arith.constant 0 : index
    %c0_71 = arith.constant 0 : index
    %69 = vector.load %arg2[%c0_69, %68, %c0_70, %c0_71] : memref<1x32x32x32xbf16, #tpu.memory_space<vmem>>, vector<1x1x32x32xbf16>
    %70 = vector.shape_cast %69 : vector<1x1x32x32xbf16> to vector<32x32xbf16>
    %c0_72 = arith.constant 0 : index
    %c0_73 = arith.constant 0 : index
    %71 = vector.load %arg6[%c0_72, %c0_73] : memref<32x128xf32, #tpu.memory_space<vmem>>, vector<32x128xf32>
    %c0_74 = arith.constant 0 : index
    %c0_75 = arith.constant 0 : index
    %c0_76 = arith.constant 0 : index
    %72 = vector.load %arg3[%c0_74, %c0_75, %c0_76] : memref<1x32x128xbf16, #tpu.memory_space<vmem>>, vector<1x32x128xbf16>
    %73 = vector.shape_cast %72 : vector<1x32x128xbf16> to vector<32x128xbf16>
    %cst_77 = arith.constant dense<0.000000e+00> : vector<32x128xf32>
    %74 = tpu.matmul %70, %73, %cst_77 {dimension_numbers = #tpu.dot_dimension_numbers<[1], [0], [0], [1], [0, 0, 1, 1], [], []>} : vector<32x32xbf16>, vector<32x128xbf16>, vector<32x128xf32> -> vector<32x128xf32>
    %75 = arith.addf %71, %74 : vector<32x128xf32>
    %c0_78 = arith.constant 0 : index
    %c0_79 = arith.constant 0 : index
    %76 = vector.load %arg6[%c0_78, %c0_79] : memref<32x128xf32, #tpu.memory_space<vmem>>, vector<32x128xf32>
    tpu.vector_store %arg6[%c0_78, %c0_79], %75 {strides = array<i32>} : memref<32x128xf32, #tpu.memory_space<vmem>>, vector<32x128xf32>,
    %c0_80 = arith.constant 0 : index
    %c0_81 = arith.constant 0 : index
    %77 = vector.load %arg6[%c0_80, %c0_81] : memref<32x128xf32, #tpu.memory_space<vmem>>, vector<32x128xf32>
    %c0_82 = arith.constant 0 : index
    %c0_83 = arith.constant 0 : index
    %78 = vector.load %arg4[%c0_82, %c0_83] : memref<1x128xf32, #tpu.memory_space<vmem>>, vector<1x128xf32>
    %79 = vector.broadcast %78 : vector<1x128xf32> to vector<32x128xf32>
    %80 = arith.addf %77, %79 : vector<32x128xf32>
    %81 = arith.truncf %80 : vector<32x128xf32> to vector<32x128xbf16>
    %c0_84 = arith.constant 0 : index
    %c3 = arith.constant 3 : index
    %c0_85 = arith.constant 0 : index
    %c0_86 = arith.constant 0 : index
    %82 = vector.load %arg5[%c0_84, %c3, %c0_85, %c0_86] : memref<1x16x32x128xbf16, #tpu.memory_space<vmem>>, vector<1x1x32x128xbf16>
    %83 = vector.shape_cast %82 : vector<1x1x32x128xbf16> to vector<32x128xbf16>
    %84 = vector.shape_cast %81 : vector<32x128xbf16> to vector<1x1x32x128xbf16>
    tpu.vector_store %arg5[%c0_84, %c3, %c0_85, %c0_86], %84 {strides = array<i32>} : memref<1x16x32x128xbf16, #tpu.memory_space<vmem>>, vector<1x1x32x128xbf16>,
    %cst_87 = arith.constant 0.000000e+00 : f32
    %85 = vector.broadcast %cst_87 : f32 to vector<32x128xf32>
    %c0_88 = arith.constant 0 : index
    %c0_89 = arith.constant 0 : index
    %86 = vector.load %arg6[%c0_88, %c0_89] : memref<32x128xf32, #tpu.memory_space<vmem>>, vector<32x128xf32>
    tpu.vector_store %arg6[%c0_88, %c0_89], %85 {strides = array<i32>} : memref<32x128xf32, #tpu.memory_space<vmem>>, vector<32x128xf32>,
    %c4_i32 = arith.constant 4 : i32
    %87 = arith.addi %0, %c4_i32 : i32
    %c0_i32_90 = arith.constant 0 : i32
    %88 = arith.addi %87, %c0_i32_90 : i32
    %c0_91 = arith.constant 0 : index
    %89 = arith.index_cast %88 : i32 to index
    %c0_92 = arith.constant 0 : index
    %c0_93 = arith.constant 0 : index
    %90 = vector.load %arg2[%c0_91, %89, %c0_92, %c0_93] : memref<1x32x32x32xbf16, #tpu.memory_space<vmem>>, vector<1x1x32x32xbf16>
    %91 = vector.shape_cast %90 : vector<1x1x32x32xbf16> to vector<32x32xbf16>
    %c0_94 = arith.constant 0 : index
    %c0_95 = arith.constant 0 : index
    %92 = vector.load %arg6[%c0_94, %c0_95] : memref<32x128xf32, #tpu.memory_space<vmem>>, vector<32x128xf32>
    %c0_96 = arith.constant 0 : index
    %c0_97 = arith.constant 0 : index
    %c0_98 = arith.constant 0 : index
    %93 = vector.load %arg3[%c0_96, %c0_97, %c0_98] : memref<1x32x128xbf16, #tpu.memory_space<vmem>>, vector<1x32x128xbf16>
    %94 = vector.shape_cast %93 : vector<1x32x128xbf16> to vector<32x128xbf16>
    %cst_99 = arith.constant dense<0.000000e+00> : vector<32x128xf32>
    %95 = tpu.matmul %91, %94, %cst_99 {dimension_numbers = #tpu.dot_dimension_numbers<[1], [0], [0], [1], [0, 0, 1, 1], [], []>} : vector<32x32xbf16>, vector<32x128xbf16>, vector<32x128xf32> -> vector<32x128xf32>
    %96 = arith.addf %92, %95 : vector<32x128xf32>
    %c0_100 = arith.constant 0 : index
    %c0_101 = arith.constant 0 : index
    %97 = vector.load %arg6[%c0_100, %c0_101] : memref<32x128xf32, #tpu.memory_space<vmem>>, vector<32x128xf32>
    tpu.vector_store %arg6[%c0_100, %c0_101], %96 {strides = array<i32>} : memref<32x128xf32, #tpu.memory_space<vmem>>, vector<32x128xf32>,
    %c0_102 = arith.constant 0 : index
    %c0_103 = arith.constant 0 : index
    %98 = vector.load %arg6[%c0_102, %c0_103] : memref<32x128xf32, #tpu.memory_space<vmem>>, vector<32x128xf32>
    %c0_104 = arith.constant 0 : index
    %c0_105 = arith.constant 0 : index
    %99 = vector.load %arg4[%c0_104, %c0_105] : memref<1x128xf32, #tpu.memory_space<vmem>>, vector<1x128xf32>
    %100 = vector.broadcast %99 : vector<1x128xf32> to vector<32x128xf32>
    %101 = arith.addf %98, %100 : vector<32x128xf32>
    %102 = arith.truncf %101 : vector<32x128xf32> to vector<32x128xbf16>
    %c0_106 = arith.constant 0 : index
    %c4 = arith.constant 4 : index
    %c0_107 = arith.constant 0 : index
    %c0_108 = arith.constant 0 : index
    %103 = vector.load %arg5[%c0_106, %c4, %c0_107, %c0_108] : memref<1x16x32x128xbf16, #tpu.memory_space<vmem>>, vector<1x1x32x128xbf16>
    %104 = vector.shape_cast %103 : vector<1x1x32x128xbf16> to vector<32x128xbf16>
    %105 = vector.shape_cast %102 : vector<32x128xbf16> to vector<1x1x32x128xbf16>
    tpu.vector_store %arg5[%c0_106, %c4, %c0_107, %c0_108], %105 {strides = array<i32>} : memref<1x16x32x128xbf16, #tpu.memory_space<vmem>>, vector<1x1x32x128xbf16>,
    %cst_109 = arith.constant 0.000000e+00 : f32
    %106 = vector.broadcast %cst_109 : f32 to vector<32x128xf32>
    %c0_110 = arith.constant 0 : index
    %c0_111 = arith.constant 0 : index
    %107 = vector.load %arg6[%c0_110, %c0_111] : memref<32x128xf32, #tpu.memory_space<vmem>>, vector<32x128xf32>
    tpu.vector_store %arg6[%c0_110, %c0_111], %106 {strides = array<i32>} : memref<32x128xf32, #tpu.memory_space<vmem>>, vector<32x128xf32>,
    %c5_i32 = arith.constant 5 : i32
    %108 = arith.addi %0, %c5_i32 : i32
    %c0_i32_112 = arith.constant 0 : i32
    %109 = arith.addi %108, %c0_i32_112 : i32
    %c0_113 = arith.constant 0 : index
    %110 = arith.index_cast %109 : i32 to index
    %c0_114 = arith.constant 0 : index
    %c0_115 = arith.constant 0 : index
    %111 = vector.load %arg2[%c0_113, %110, %c0_114, %c0_115] : memref<1x32x32x32xbf16, #tpu.memory_space<vmem>>, vector<1x1x32x32xbf16>
    %112 = vector.shape_cast %111 : vector<1x1x32x32xbf16> to vector<32x32xbf16>
    %c0_116 = arith.constant 0 : index
    %c0_117 = arith.constant 0 : index
    %113 = vector.load %arg6[%c0_116, %c0_117] : memref<32x128xf32, #tpu.memory_space<vmem>>, vector<32x128xf32>
    %c0_118 = arith.constant 0 : index
    %c0_119 = arith.constant 0 : index
    %c0_120 = arith.constant 0 : index
    %114 = vector.load %arg3[%c0_118, %c0_119, %c0_120] : memref<1x32x128xbf16, #tpu.memory_space<vmem>>, vector<1x32x128xbf16>
    %115 = vector.shape_cast %114 : vector<1x32x128xbf16> to vector<32x128xbf16>
    %cst_121 = arith.constant dense<0.000000e+00> : vector<32x128xf32>
    %116 = tpu.matmul %112, %115, %cst_121 {dimension_numbers = #tpu.dot_dimension_numbers<[1], [0], [0], [1], [0, 0, 1, 1], [], []>} : vector<32x32xbf16>, vector<32x128xbf16>, vector<32x128xf32> -> vector<32x128xf32>
    %117 = arith.addf %113, %116 : vector<32x128xf32>
    %c0_122 = arith.constant 0 : index
    %c0_123 = arith.constant 0 : index
    %118 = vector.load %arg6[%c0_122, %c0_123] : memref<32x128xf32, #tpu.memory_space<vmem>>, vector<32x128xf32>
    tpu.vector_store %arg6[%c0_122, %c0_123], %117 {strides = array<i32>} : memref<32x128xf32, #tpu.memory_space<vmem>>, vector<32x128xf32>,
    %c0_124 = arith.constant 0 : index
    %c0_125 = arith.constant 0 : index
    %119 = vector.load %arg6[%c0_124, %c0_125] : memref<32x128xf32, #tpu.memory_space<vmem>>, vector<32x128xf32>
    %c0_126 = arith.constant 0 : index
    %c0_127 = arith.constant 0 : index
    %120 = vector.load %arg4[%c0_126, %c0_127] : memref<1x128xf32, #tpu.memory_space<vmem>>, vector<1x128xf32>
    %121 = vector.broadcast %120 : vector<1x128xf32> to vector<32x128xf32>
    %122 = arith.addf %119, %121 : vector<32x128xf32>
    %123 = arith.truncf %122 : vector<32x128xf32> to vector<32x128xbf16>
    %c0_128 = arith.constant 0 : index
    %c5 = arith.constant 5 : index
    %c0_129 = arith.constant 0 : index
    %c0_130 = arith.constant 0 : index
    %124 = vector.load %arg5[%c0_128, %c5, %c0_129, %c0_130] : memref<1x16x32x128xbf16, #tpu.memory_space<vmem>>, vector<1x1x32x128xbf16>
    %125 = vector.shape_cast %124 : vector<1x1x32x128xbf16> to vector<32x128xbf16>
    %126 = vector.shape_cast %123 : vector<32x128xbf16> to vector<1x1x32x128xbf16>
    tpu.vector_store %arg5[%c0_128, %c5, %c0_129, %c0_130], %126 {strides = array<i32>} : memref<1x16x32x128xbf16, #tpu.memory_space<vmem>>, vector<1x1x32x128xbf16>,
    %cst_131 = arith.constant 0.000000e+00 : f32
    %127 = vector.broadcast %cst_131 : f32 to vector<32x128xf32>
    %c0_132 = arith.constant 0 : index
    %c0_133 = arith.constant 0 : index
    %128 = vector.load %arg6[%c0_132, %c0_133] : memref<32x128xf32, #tpu.memory_space<vmem>>, vector<32x128xf32>
    tpu.vector_store %arg6[%c0_132, %c0_133], %127 {strides = array<i32>} : memref<32x128xf32, #tpu.memory_space<vmem>>, vector<32x128xf32>,
    %c6_i32 = arith.constant 6 : i32
    %129 = arith.addi %0, %c6_i32 : i32
    %c0_i32_134 = arith.constant 0 : i32
    %130 = arith.addi %129, %c0_i32_134 : i32
    %c0_135 = arith.constant 0 : index
    %131 = arith.index_cast %130 : i32 to index
    %c0_136 = arith.constant 0 : index
    %c0_137 = arith.constant 0 : index
    %132 = vector.load %arg2[%c0_135, %131, %c0_136, %c0_137] : memref<1x32x32x32xbf16, #tpu.memory_space<vmem>>, vector<1x1x32x32xbf16>
    %133 = vector.shape_cast %132 : vector<1x1x32x32xbf16> to vector<32x32xbf16>
    %c0_138 = arith.constant 0 : index
    %c0_139 = arith.constant 0 : index
    %134 = vector.load %arg6[%c0_138, %c0_139] : memref<32x128xf32, #tpu.memory_space<vmem>>, vector<32x128xf32>
    %c0_140 = arith.constant 0 : index
    %c0_141 = arith.constant 0 : index
    %c0_142 = arith.constant 0 : index
    %135 = vector.load %arg3[%c0_140, %c0_141, %c0_142] : memref<1x32x128xbf16, #tpu.memory_space<vmem>>, vector<1x32x128xbf16>
    %136 = vector.shape_cast %135 : vector<1x32x128xbf16> to vector<32x128xbf16>
    %cst_143 = arith.constant dense<0.000000e+00> : vector<32x128xf32>
    %137 = tpu.matmul %133, %136, %cst_143 {dimension_numbers = #tpu.dot_dimension_numbers<[1], [0], [0], [1], [0, 0, 1, 1], [], []>} : vector<32x32xbf16>, vector<32x128xbf16>, vector<32x128xf32> -> vector<32x128xf32>
    %138 = arith.addf %134, %137 : vector<32x128xf32>
    %c0_144 = arith.constant 0 : index
    %c0_145 = arith.constant 0 : index
    %139 = vector.load %arg6[%c0_144, %c0_145] : memref<32x128xf32, #tpu.memory_space<vmem>>, vector<32x128xf32>
    tpu.vector_store %arg6[%c0_144, %c0_145], %138 {strides = array<i32>} : memref<32x128xf32, #tpu.memory_space<vmem>>, vector<32x128xf32>,
    %c0_146 = arith.constant 0 : index
    %c0_147 = arith.constant 0 : index
    %140 = vector.load %arg6[%c0_146, %c0_147] : memref<32x128xf32, #tpu.memory_space<vmem>>, vector<32x128xf32>
    %c0_148 = arith.constant 0 : index
    %c0_149 = arith.constant 0 : index
    %141 = vector.load %arg4[%c0_148, %c0_149] : memref<1x128xf32, #tpu.memory_space<vmem>>, vector<1x128xf32>
    %142 = vector.broadcast %141 : vector<1x128xf32> to vector<32x128xf32>
    %143 = arith.addf %140, %142 : vector<32x128xf32>
    %144 = arith.truncf %143 : vector<32x128xf32> to vector<32x128xbf16>
    %c0_150 = arith.constant 0 : index
    %c6 = arith.constant 6 : index
    %c0_151 = arith.constant 0 : index
    %c0_152 = arith.constant 0 : index
    %145 = vector.load %arg5[%c0_150, %c6, %c0_151, %c0_152] : memref<1x16x32x128xbf16, #tpu.memory_space<vmem>>, vector<1x1x32x128xbf16>
    %146 = vector.shape_cast %145 : vector<1x1x32x128xbf16> to vector<32x128xbf16>
    %147 = vector.shape_cast %144 : vector<32x128xbf16> to vector<1x1x32x128xbf16>
    tpu.vector_store %arg5[%c0_150, %c6, %c0_151, %c0_152], %147 {strides = array<i32>} : memref<1x16x32x128xbf16, #tpu.memory_space<vmem>>, vector<1x1x32x128xbf16>,
    %cst_153 = arith.constant 0.000000e+00 : f32
    %148 = vector.broadcast %cst_153 : f32 to vector<32x128xf32>
    %c0_154 = arith.constant 0 : index
    %c0_155 = arith.constant 0 : index
    %149 = vector.load %arg6[%c0_154, %c0_155] : memref<32x128xf32, #tpu.memory_space<vmem>>, vector<32x128xf32>
    tpu.vector_store %arg6[%c0_154, %c0_155], %148 {strides = array<i32>} : memref<32x128xf32, #tpu.memory_space<vmem>>, vector<32x128xf32>,
    %c7_i32 = arith.constant 7 : i32
    %150 = arith.addi %0, %c7_i32 : i32
    %c0_i32_156 = arith.constant 0 : i32
    %151 = arith.addi %150, %c0_i32_156 : i32
    %c0_157 = arith.constant 0 : index
    %152 = arith.index_cast %151 : i32 to index
    %c0_158 = arith.constant 0 : index
    %c0_159 = arith.constant 0 : index
    %153 = vector.load %arg2[%c0_157, %152, %c0_158, %c0_159] : memref<1x32x32x32xbf16, #tpu.memory_space<vmem>>, vector<1x1x32x32xbf16>
    %154 = vector.shape_cast %153 : vector<1x1x32x32xbf16> to vector<32x32xbf16>
    %c0_160 = arith.constant 0 : index
    %c0_161 = arith.constant 0 : index
    %155 = vector.load %arg6[%c0_160, %c0_161] : memref<32x128xf32, #tpu.memory_space<vmem>>, vector<32x128xf32>
    %c0_162 = arith.constant 0 : index
    %c0_163 = arith.constant 0 : index
    %c0_164 = arith.constant 0 : index
    %156 = vector.load %arg3[%c0_162, %c0_163, %c0_164] : memref<1x32x128xbf16, #tpu.memory_space<vmem>>, vector<1x32x128xbf16>
    %157 = vector.shape_cast %156 : vector<1x32x128xbf16> to vector<32x128xbf16>
    %cst_165 = arith.constant dense<0.000000e+00> : vector<32x128xf32>
    %158 = tpu.matmul %154, %157, %cst_165 {dimension_numbers = #tpu.dot_dimension_numbers<[1], [0], [0], [1], [0, 0, 1, 1], [], []>} : vector<32x32xbf16>, vector<32x128xbf16>, vector<32x128xf32> -> vector<32x128xf32>
    %159 = arith.addf %155, %158 : vector<32x128xf32>
    %c0_166 = arith.constant 0 : index
    %c0_167 = arith.constant 0 : index
    %160 = vector.load %arg6[%c0_166, %c0_167] : memref<32x128xf32, #tpu.memory_space<vmem>>, vector<32x128xf32>
    tpu.vector_store %arg6[%c0_166, %c0_167], %159 {strides = array<i32>} : memref<32x128xf32, #tpu.memory_space<vmem>>, vector<32x128xf32>,
    %c0_168 = arith.constant 0 : index
    %c0_169 = arith.constant 0 : index
    %161 = vector.load %arg6[%c0_168, %c0_169] : memref<32x128xf32, #tpu.memory_space<vmem>>, vector<32x128xf32>
    %c0_170 = arith.constant 0 : index
    %c0_171 = arith.constant 0 : index
    %162 = vector.load %arg4[%c0_170, %c0_171] : memref<1x128xf32, #tpu.memory_space<vmem>>, vector<1x128xf32>
    %163 = vector.broadcast %162 : vector<1x128xf32> to vector<32x128xf32>
    %164 = arith.addf %161, %163 : vector<32x128xf32>
    %165 = arith.truncf %164 : vector<32x128xf32> to vector<32x128xbf16>
    %c0_172 = arith.constant 0 : index
    %c7 = arith.constant 7 : index
    %c0_173 = arith.constant 0 : index
    %c0_174 = arith.constant 0 : index
    %166 = vector.load %arg5[%c0_172, %c7, %c0_173, %c0_174] : memref<1x16x32x128xbf16, #tpu.memory_space<vmem>>, vector<1x1x32x128xbf16>
    %167 = vector.shape_cast %166 : vector<1x1x32x128xbf16> to vector<32x128xbf16>
    %168 = vector.shape_cast %165 : vector<32x128xbf16> to vector<1x1x32x128xbf16>
    tpu.vector_store %arg5[%c0_172, %c7, %c0_173, %c0_174], %168 {strides = array<i32>} : memref<1x16x32x128xbf16, #tpu.memory_space<vmem>>, vector<1x1x32x128xbf16>,
    %cst_175 = arith.constant 0.000000e+00 : f32
    %169 = vector.broadcast %cst_175 : f32 to vector<32x128xf32>
    %c0_176 = arith.constant 0 : index
    %c0_177 = arith.constant 0 : index
    %170 = vector.load %arg6[%c0_176, %c0_177] : memref<32x128xf32, #tpu.memory_space<vmem>>, vector<32x128xf32>
    tpu.vector_store %arg6[%c0_176, %c0_177], %169 {strides = array<i32>} : memref<32x128xf32, #tpu.memory_space<vmem>>, vector<32x128xf32>,
    %c8_i32 = arith.constant 8 : i32
    %171 = arith.addi %0, %c8_i32 : i32
    %c0_i32_178 = arith.constant 0 : i32
    %172 = arith.addi %171, %c0_i32_178 : i32
    %c0_179 = arith.constant 0 : index
    %173 = arith.index_cast %172 : i32 to index
    %c0_180 = arith.constant 0 : index
    %c0_181 = arith.constant 0 : index
    %174 = vector.load %arg2[%c0_179, %173, %c0_180, %c0_181] : memref<1x32x32x32xbf16, #tpu.memory_space<vmem>>, vector<1x1x32x32xbf16>
    %175 = vector.shape_cast %174 : vector<1x1x32x32xbf16> to vector<32x32xbf16>
    %c0_182 = arith.constant 0 : index
    %c0_183 = arith.constant 0 : index
    %176 = vector.load %arg6[%c0_182, %c0_183] : memref<32x128xf32, #tpu.memory_space<vmem>>, vector<32x128xf32>
    %c0_184 = arith.constant 0 : index
    %c0_185 = arith.constant 0 : index
    %c0_186 = arith.constant 0 : index
    %177 = vector.load %arg3[%c0_184, %c0_185, %c0_186] : memref<1x32x128xbf16, #tpu.memory_space<vmem>>, vector<1x32x128xbf16>
    %178 = vector.shape_cast %177 : vector<1x32x128xbf16> to vector<32x128xbf16>
    %cst_187 = arith.constant dense<0.000000e+00> : vector<32x128xf32>
    %179 = tpu.matmul %175, %178, %cst_187 {dimension_numbers = #tpu.dot_dimension_numbers<[1], [0], [0], [1], [0, 0, 1, 1], [], []>} : vector<32x32xbf16>, vector<32x128xbf16>, vector<32x128xf32> -> vector<32x128xf32>
    %180 = arith.addf %176, %179 : vector<32x128xf32>
    %c0_188 = arith.constant 0 : index
    %c0_189 = arith.constant 0 : index
    %181 = vector.load %arg6[%c0_188, %c0_189] : memref<32x128xf32, #tpu.memory_space<vmem>>, vector<32x128xf32>
    tpu.vector_store %arg6[%c0_188, %c0_189], %180 {strides = array<i32>} : memref<32x128xf32, #tpu.memory_space<vmem>>, vector<32x128xf32>,
    %c0_190 = arith.constant 0 : index
    %c0_191 = arith.constant 0 : index
    %182 = vector.load %arg6[%c0_190, %c0_191] : memref<32x128xf32, #tpu.memory_space<vmem>>, vector<32x128xf32>
    %c0_192 = arith.constant 0 : index
    %c0_193 = arith.constant 0 : index
    %183 = vector.load %arg4[%c0_192, %c0_193] : memref<1x128xf32, #tpu.memory_space<vmem>>, vector<1x128xf32>
    %184 = vector.broadcast %183 : vector<1x128xf32> to vector<32x128xf32>
    %185 = arith.addf %182, %184 : vector<32x128xf32>
    %186 = arith.truncf %185 : vector<32x128xf32> to vector<32x128xbf16>
    %c0_194 = arith.constant 0 : index
    %c8 = arith.constant 8 : index
    %c0_195 = arith.constant 0 : index
    %c0_196 = arith.constant 0 : index
    %187 = vector.load %arg5[%c0_194, %c8, %c0_195, %c0_196] : memref<1x16x32x128xbf16, #tpu.memory_space<vmem>>, vector<1x1x32x128xbf16>
    %188 = vector.shape_cast %187 : vector<1x1x32x128xbf16> to vector<32x128xbf16>
    %189 = vector.shape_cast %186 : vector<32x128xbf16> to vector<1x1x32x128xbf16>
    tpu.vector_store %arg5[%c0_194, %c8, %c0_195, %c0_196], %189 {strides = array<i32>} : memref<1x16x32x128xbf16, #tpu.memory_space<vmem>>, vector<1x1x32x128xbf16>,
    %cst_197 = arith.constant 0.000000e+00 : f32
    %190 = vector.broadcast %cst_197 : f32 to vector<32x128xf32>
    %c0_198 = arith.constant 0 : index
    %c0_199 = arith.constant 0 : index
    %191 = vector.load %arg6[%c0_198, %c0_199] : memref<32x128xf32, #tpu.memory_space<vmem>>, vector<32x128xf32>
    tpu.vector_store %arg6[%c0_198, %c0_199], %190 {strides = array<i32>} : memref<32x128xf32, #tpu.memory_space<vmem>>, vector<32x128xf32>,
    %c9_i32 = arith.constant 9 : i32
    %192 = arith.addi %0, %c9_i32 : i32
    %c0_i32_200 = arith.constant 0 : i32
    %193 = arith.addi %192, %c0_i32_200 : i32
    %c0_201 = arith.constant 0 : index
    %194 = arith.index_cast %193 : i32 to index
    %c0_202 = arith.constant 0 : index
    %c0_203 = arith.constant 0 : index
    %195 = vector.load %arg2[%c0_201, %194, %c0_202, %c0_203] : memref<1x32x32x32xbf16, #tpu.memory_space<vmem>>, vector<1x1x32x32xbf16>
    %196 = vector.shape_cast %195 : vector<1x1x32x32xbf16> to vector<32x32xbf16>
    %c0_204 = arith.constant 0 : index
    %c0_205 = arith.constant 0 : index
    %197 = vector.load %arg6[%c0_204, %c0_205] : memref<32x128xf32, #tpu.memory_space<vmem>>, vector<32x128xf32>
    %c0_206 = arith.constant 0 : index
    %c0_207 = arith.constant 0 : index
    %c0_208 = arith.constant 0 : index
    %198 = vector.load %arg3[%c0_206, %c0_207, %c0_208] : memref<1x32x128xbf16, #tpu.memory_space<vmem>>, vector<1x32x128xbf16>
    %199 = vector.shape_cast %198 : vector<1x32x128xbf16> to vector<32x128xbf16>
    %cst_209 = arith.constant dense<0.000000e+00> : vector<32x128xf32>
    %200 = tpu.matmul %196, %199, %cst_209 {dimension_numbers = #tpu.dot_dimension_numbers<[1], [0], [0], [1], [0, 0, 1, 1], [], []>} : vector<32x32xbf16>, vector<32x128xbf16>, vector<32x128xf32> -> vector<32x128xf32>
    %201 = arith.addf %197, %200 : vector<32x128xf32>
    %c0_210 = arith.constant 0 : index
    %c0_211 = arith.constant 0 : index
    %202 = vector.load %arg6[%c0_210, %c0_211] : memref<32x128xf32, #tpu.memory_space<vmem>>, vector<32x128xf32>
    tpu.vector_store %arg6[%c0_210, %c0_211], %201 {strides = array<i32>} : memref<32x128xf32, #tpu.memory_space<vmem>>, vector<32x128xf32>,
    %c0_212 = arith.constant 0 : index
    %c0_213 = arith.constant 0 : index
    %203 = vector.load %arg6[%c0_212, %c0_213] : memref<32x128xf32, #tpu.memory_space<vmem>>, vector<32x128xf32>
    %c0_214 = arith.constant 0 : index
    %c0_215 = arith.constant 0 : index
    %204 = vector.load %arg4[%c0_214, %c0_215] : memref<1x128xf32, #tpu.memory_space<vmem>>, vector<1x128xf32>
    %205 = vector.broadcast %204 : vector<1x128xf32> to vector<32x128xf32>
    %206 = arith.addf %203, %205 : vector<32x128xf32>
    %207 = arith.truncf %206 : vector<32x128xf32> to vector<32x128xbf16>
    %c0_216 = arith.constant 0 : index
    %c9 = arith.constant 9 : index
    %c0_217 = arith.constant 0 : index
    %c0_218 = arith.constant 0 : index
    %208 = vector.load %arg5[%c0_216, %c9, %c0_217, %c0_218] : memref<1x16x32x128xbf16, #tpu.memory_space<vmem>>, vector<1x1x32x128xbf16>
    %209 = vector.shape_cast %208 : vector<1x1x32x128xbf16> to vector<32x128xbf16>
    %210 = vector.shape_cast %207 : vector<32x128xbf16> to vector<1x1x32x128xbf16>
    tpu.vector_store %arg5[%c0_216, %c9, %c0_217, %c0_218], %210 {strides = array<i32>} : memref<1x16x32x128xbf16, #tpu.memory_space<vmem>>, vector<1x1x32x128xbf16>,
    %cst_219 = arith.constant 0.000000e+00 : f32
    %211 = vector.broadcast %cst_219 : f32 to vector<32x128xf32>
    %c0_220 = arith.constant 0 : index
    %c0_221 = arith.constant 0 : index
    %212 = vector.load %arg6[%c0_220, %c0_221] : memref<32x128xf32, #tpu.memory_space<vmem>>, vector<32x128xf32>
    tpu.vector_store %arg6[%c0_220, %c0_221], %211 {strides = array<i32>} : memref<32x128xf32, #tpu.memory_space<vmem>>, vector<32x128xf32>,
    %c10_i32 = arith.constant 10 : i32
    %213 = arith.addi %0, %c10_i32 : i32
    %c0_i32_222 = arith.constant 0 : i32
    %214 = arith.addi %213, %c0_i32_222 : i32
    %c0_223 = arith.constant 0 : index
    %215 = arith.index_cast %214 : i32 to index
    %c0_224 = arith.constant 0 : index
    %c0_225 = arith.constant 0 : index
    %216 = vector.load %arg2[%c0_223, %215, %c0_224, %c0_225] : memref<1x32x32x32xbf16, #tpu.memory_space<vmem>>, vector<1x1x32x32xbf16>
    %217 = vector.shape_cast %216 : vector<1x1x32x32xbf16> to vector<32x32xbf16>
    %c0_226 = arith.constant 0 : index
    %c0_227 = arith.constant 0 : index
    %218 = vector.load %arg6[%c0_226, %c0_227] : memref<32x128xf32, #tpu.memory_space<vmem>>, vector<32x128xf32>
    %c0_228 = arith.constant 0 : index
    %c0_229 = arith.constant 0 : index
    %c0_230 = arith.constant 0 : index
    %219 = vector.load %arg3[%c0_228, %c0_229, %c0_230] : memref<1x32x128xbf16, #tpu.memory_space<vmem>>, vector<1x32x128xbf16>
    %220 = vector.shape_cast %219 : vector<1x32x128xbf16> to vector<32x128xbf16>
    %cst_231 = arith.constant dense<0.000000e+00> : vector<32x128xf32>
    %221 = tpu.matmul %217, %220, %cst_231 {dimension_numbers = #tpu.dot_dimension_numbers<[1], [0], [0], [1], [0, 0, 1, 1], [], []>} : vector<32x32xbf16>, vector<32x128xbf16>, vector<32x128xf32> -> vector<32x128xf32>
    %222 = arith.addf %218, %221 : vector<32x128xf32>
    %c0_232 = arith.constant 0 : index
    %c0_233 = arith.constant 0 : index
    %223 = vector.load %arg6[%c0_232, %c0_233] : memref<32x128xf32, #tpu.memory_space<vmem>>, vector<32x128xf32>
    tpu.vector_store %arg6[%c0_232, %c0_233], %222 {strides = array<i32>} : memref<32x128xf32, #tpu.memory_space<vmem>>, vector<32x128xf32>,
    %c0_234 = arith.constant 0 : index
    %c0_235 = arith.constant 0 : index
    %224 = vector.load %arg6[%c0_234, %c0_235] : memref<32x128xf32, #tpu.memory_space<vmem>>, vector<32x128xf32>
    %c0_236 = arith.constant 0 : index
    %c0_237 = arith.constant 0 : index
    %225 = vector.load %arg4[%c0_236, %c0_237] : memref<1x128xf32, #tpu.memory_space<vmem>>, vector<1x128xf32>
    %226 = vector.broadcast %225 : vector<1x128xf32> to vector<32x128xf32>
    %227 = arith.addf %224, %226 : vector<32x128xf32>
    %228 = arith.truncf %227 : vector<32x128xf32> to vector<32x128xbf16>
    %c0_238 = arith.constant 0 : index
    %c10 = arith.constant 10 : index
    %c0_239 = arith.constant 0 : index
    %c0_240 = arith.constant 0 : index
    %229 = vector.load %arg5[%c0_238, %c10, %c0_239, %c0_240] : memref<1x16x32x128xbf16, #tpu.memory_space<vmem>>, vector<1x1x32x128xbf16>
    %230 = vector.shape_cast %229 : vector<1x1x32x128xbf16> to vector<32x128xbf16>
    %231 = vector.shape_cast %228 : vector<32x128xbf16> to vector<1x1x32x128xbf16>
    tpu.vector_store %arg5[%c0_238, %c10, %c0_239, %c0_240], %231 {strides = array<i32>} : memref<1x16x32x128xbf16, #tpu.memory_space<vmem>>, vector<1x1x32x128xbf16>,
    %cst_241 = arith.constant 0.000000e+00 : f32
    %232 = vector.broadcast %cst_241 : f32 to vector<32x128xf32>
    %c0_242 = arith.constant 0 : index
    %c0_243 = arith.constant 0 : index
    %233 = vector.load %arg6[%c0_242, %c0_243] : memref<32x128xf32, #tpu.memory_space<vmem>>, vector<32x128xf32>
    tpu.vector_store %arg6[%c0_242, %c0_243], %232 {strides = array<i32>} : memref<32x128xf32, #tpu.memory_space<vmem>>, vector<32x128xf32>,
    %c11_i32 = arith.constant 11 : i32
    %234 = arith.addi %0, %c11_i32 : i32
    %c0_i32_244 = arith.constant 0 : i32
    %235 = arith.addi %234, %c0_i32_244 : i32
    %c0_245 = arith.constant 0 : index
    %236 = arith.index_cast %235 : i32 to index
    %c0_246 = arith.constant 0 : index
    %c0_247 = arith.constant 0 : index
    %237 = vector.load %arg2[%c0_245, %236, %c0_246, %c0_247] : memref<1x32x32x32xbf16, #tpu.memory_space<vmem>>, vector<1x1x32x32xbf16>
    %238 = vector.shape_cast %237 : vector<1x1x32x32xbf16> to vector<32x32xbf16>
    %c0_248 = arith.constant 0 : index
    %c0_249 = arith.constant 0 : index
    %239 = vector.load %arg6[%c0_248, %c0_249] : memref<32x128xf32, #tpu.memory_space<vmem>>, vector<32x128xf32>
    %c0_250 = arith.constant 0 : index
    %c0_251 = arith.constant 0 : index
    %c0_252 = arith.constant 0 : index
    %240 = vector.load %arg3[%c0_250, %c0_251, %c0_252] : memref<1x32x128xbf16, #tpu.memory_space<vmem>>, vector<1x32x128xbf16>
    %241 = vector.shape_cast %240 : vector<1x32x128xbf16> to vector<32x128xbf16>
    %cst_253 = arith.constant dense<0.000000e+00> : vector<32x128xf32>
    %242 = tpu.matmul %238, %241, %cst_253 {dimension_numbers = #tpu.dot_dimension_numbers<[1], [0], [0], [1], [0, 0, 1, 1], [], []>} : vector<32x32xbf16>, vector<32x128xbf16>, vector<32x128xf32> -> vector<32x128xf32>
    %243 = arith.addf %239, %242 : vector<32x128xf32>
    %c0_254 = arith.constant 0 : index
    %c0_255 = arith.constant 0 : index
    %244 = vector.load %arg6[%c0_254, %c0_255] : memref<32x128xf32, #tpu.memory_space<vmem>>, vector<32x128xf32>
    tpu.vector_store %arg6[%c0_254, %c0_255], %243 {strides = array<i32>} : memref<32x128xf32, #tpu.memory_space<vmem>>, vector<32x128xf32>,
    %c0_256 = arith.constant 0 : index
    %c0_257 = arith.constant 0 : index
    %245 = vector.load %arg6[%c0_256, %c0_257] : memref<32x128xf32, #tpu.memory_space<vmem>>, vector<32x128xf32>
    %c0_258 = arith.constant 0 : index
    %c0_259 = arith.constant 0 : index
    %246 = vector.load %arg4[%c0_258, %c0_259] : memref<1x128xf32, #tpu.memory_space<vmem>>, vector<1x128xf32>
    %247 = vector.broadcast %246 : vector<1x128xf32> to vector<32x128xf32>
    %248 = arith.addf %245, %247 : vector<32x128xf32>
    %249 = arith.truncf %248 : vector<32x128xf32> to vector<32x128xbf16>
    %c0_260 = arith.constant 0 : index
    %c11 = arith.constant 11 : index
    %c0_261 = arith.constant 0 : index
    %c0_262 = arith.constant 0 : index
    %250 = vector.load %arg5[%c0_260, %c11, %c0_261, %c0_262] : memref<1x16x32x128xbf16, #tpu.memory_space<vmem>>, vector<1x1x32x128xbf16>
    %251 = vector.shape_cast %250 : vector<1x1x32x128xbf16> to vector<32x128xbf16>
    %252 = vector.shape_cast %249 : vector<32x128xbf16> to vector<1x1x32x128xbf16>
    tpu.vector_store %arg5[%c0_260, %c11, %c0_261, %c0_262], %252 {strides = array<i32>} : memref<1x16x32x128xbf16, #tpu.memory_space<vmem>>, vector<1x1x32x128xbf16>,
    %cst_263 = arith.constant 0.000000e+00 : f32
    %253 = vector.broadcast %cst_263 : f32 to vector<32x128xf32>
    %c0_264 = arith.constant 0 : index
    %c0_265 = arith.constant 0 : index
    %254 = vector.load %arg6[%c0_264, %c0_265] : memref<32x128xf32, #tpu.memory_space<vmem>>, vector<32x128xf32>
    tpu.vector_store %arg6[%c0_264, %c0_265], %253 {strides = array<i32>} : memref<32x128xf32, #tpu.memory_space<vmem>>, vector<32x128xf32>,
    %c12_i32 = arith.constant 12 : i32
    %255 = arith.addi %0, %c12_i32 : i32
    %c0_i32_266 = arith.constant 0 : i32
    %256 = arith.addi %255, %c0_i32_266 : i32
    %c0_267 = arith.constant 0 : index
    %257 = arith.index_cast %256 : i32 to index
    %c0_268 = arith.constant 0 : index
    %c0_269 = arith.constant 0 : index
    %258 = vector.load %arg2[%c0_267, %257, %c0_268, %c0_269] : memref<1x32x32x32xbf16, #tpu.memory_space<vmem>>, vector<1x1x32x32xbf16>
    %259 = vector.shape_cast %258 : vector<1x1x32x32xbf16> to vector<32x32xbf16>
    %c0_270 = arith.constant 0 : index
    %c0_271 = arith.constant 0 : index
    %260 = vector.load %arg6[%c0_270, %c0_271] : memref<32x128xf32, #tpu.memory_space<vmem>>, vector<32x128xf32>
    %c0_272 = arith.constant 0 : index
    %c0_273 = arith.constant 0 : index
    %c0_274 = arith.constant 0 : index
    %261 = vector.load %arg3[%c0_272, %c0_273, %c0_274] : memref<1x32x128xbf16, #tpu.memory_space<vmem>>, vector<1x32x128xbf16>
    %262 = vector.shape_cast %261 : vector<1x32x128xbf16> to vector<32x128xbf16>
    %cst_275 = arith.constant dense<0.000000e+00> : vector<32x128xf32>
    %263 = tpu.matmul %259, %262, %cst_275 {dimension_numbers = #tpu.dot_dimension_numbers<[1], [0], [0], [1], [0, 0, 1, 1], [], []>} : vector<32x32xbf16>, vector<32x128xbf16>, vector<32x128xf32> -> vector<32x128xf32>
    %264 = arith.addf %260, %263 : vector<32x128xf32>
    %c0_276 = arith.constant 0 : index
    %c0_277 = arith.constant 0 : index
    %265 = vector.load %arg6[%c0_276, %c0_277] : memref<32x128xf32, #tpu.memory_space<vmem>>, vector<32x128xf32>
    tpu.vector_store %arg6[%c0_276, %c0_277], %264 {strides = array<i32>} : memref<32x128xf32, #tpu.memory_space<vmem>>, vector<32x128xf32>,
    %c0_278 = arith.constant 0 : index
    %c0_279 = arith.constant 0 : index
    %266 = vector.load %arg6[%c0_278, %c0_279] : memref<32x128xf32, #tpu.memory_space<vmem>>, vector<32x128xf32>
    %c0_280 = arith.constant 0 : index
    %c0_281 = arith.constant 0 : index
    %267 = vector.load %arg4[%c0_280, %c0_281] : memref<1x128xf32, #tpu.memory_space<vmem>>, vector<1x128xf32>
    %268 = vector.broadcast %267 : vector<1x128xf32> to vector<32x128xf32>
    %269 = arith.addf %266, %268 : vector<32x128xf32>
    %270 = arith.truncf %269 : vector<32x128xf32> to vector<32x128xbf16>
    %c0_282 = arith.constant 0 : index
    %c12 = arith.constant 12 : index
    %c0_283 = arith.constant 0 : index
    %c0_284 = arith.constant 0 : index
    %271 = vector.load %arg5[%c0_282, %c12, %c0_283, %c0_284] : memref<1x16x32x128xbf16, #tpu.memory_space<vmem>>, vector<1x1x32x128xbf16>
    %272 = vector.shape_cast %271 : vector<1x1x32x128xbf16> to vector<32x128xbf16>
    %273 = vector.shape_cast %270 : vector<32x128xbf16> to vector<1x1x32x128xbf16>
    tpu.vector_store %arg5[%c0_282, %c12, %c0_283, %c0_284], %273 {strides = array<i32>} : memref<1x16x32x128xbf16, #tpu.memory_space<vmem>>, vector<1x1x32x128xbf16>,
    %cst_285 = arith.constant 0.000000e+00 : f32
    %274 = vector.broadcast %cst_285 : f32 to vector<32x128xf32>
    %c0_286 = arith.constant 0 : index
    %c0_287 = arith.constant 0 : index
    %275 = vector.load %arg6[%c0_286, %c0_287] : memref<32x128xf32, #tpu.memory_space<vmem>>, vector<32x128xf32>
    tpu.vector_store %arg6[%c0_286, %c0_287], %274 {strides = array<i32>} : memref<32x128xf32, #tpu.memory_space<vmem>>, vector<32x128xf32>,
    %c13_i32 = arith.constant 13 : i32
    %276 = arith.addi %0, %c13_i32 : i32
    %c0_i32_288 = arith.constant 0 : i32
    %277 = arith.addi %276, %c0_i32_288 : i32
    %c0_289 = arith.constant 0 : index
    %278 = arith.index_cast %277 : i32 to index
    %c0_290 = arith.constant 0 : index
    %c0_291 = arith.constant 0 : index
    %279 = vector.load %arg2[%c0_289, %278, %c0_290, %c0_291] : memref<1x32x32x32xbf16, #tpu.memory_space<vmem>>, vector<1x1x32x32xbf16>
    %280 = vector.shape_cast %279 : vector<1x1x32x32xbf16> to vector<32x32xbf16>
    %c0_292 = arith.constant 0 : index
    %c0_293 = arith.constant 0 : index
    %281 = vector.load %arg6[%c0_292, %c0_293] : memref<32x128xf32, #tpu.memory_space<vmem>>, vector<32x128xf32>
    %c0_294 = arith.constant 0 : index
    %c0_295 = arith.constant 0 : index
    %c0_296 = arith.constant 0 : index
    %282 = vector.load %arg3[%c0_294, %c0_295, %c0_296] : memref<1x32x128xbf16, #tpu.memory_space<vmem>>, vector<1x32x128xbf16>
    %283 = vector.shape_cast %282 : vector<1x32x128xbf16> to vector<32x128xbf16>
    %cst_297 = arith.constant dense<0.000000e+00> : vector<32x128xf32>
    %284 = tpu.matmul %280, %283, %cst_297 {dimension_numbers = #tpu.dot_dimension_numbers<[1], [0], [0], [1], [0, 0, 1, 1], [], []>} : vector<32x32xbf16>, vector<32x128xbf16>, vector<32x128xf32> -> vector<32x128xf32>
    %285 = arith.addf %281, %284 : vector<32x128xf32>
    %c0_298 = arith.constant 0 : index
    %c0_299 = arith.constant 0 : index
    %286 = vector.load %arg6[%c0_298, %c0_299] : memref<32x128xf32, #tpu.memory_space<vmem>>, vector<32x128xf32>
    tpu.vector_store %arg6[%c0_298, %c0_299], %285 {strides = array<i32>} : memref<32x128xf32, #tpu.memory_space<vmem>>, vector<32x128xf32>,
    %c0_300 = arith.constant 0 : index
    %c0_301 = arith.constant 0 : index
    %287 = vector.load %arg6[%c0_300, %c0_301] : memref<32x128xf32, #tpu.memory_space<vmem>>, vector<32x128xf32>
    %c0_302 = arith.constant 0 : index
    %c0_303 = arith.constant 0 : index
    %288 = vector.load %arg4[%c0_302, %c0_303] : memref<1x128xf32, #tpu.memory_space<vmem>>, vector<1x128xf32>
    %289 = vector.broadcast %288 : vector<1x128xf32> to vector<32x128xf32>
    %290 = arith.addf %287, %289 : vector<32x128xf32>
    %291 = arith.truncf %290 : vector<32x128xf32> to vector<32x128xbf16>
    %c0_304 = arith.constant 0 : index
    %c13 = arith.constant 13 : index
    %c0_305 = arith.constant 0 : index
    %c0_306 = arith.constant 0 : index
    %292 = vector.load %arg5[%c0_304, %c13, %c0_305, %c0_306] : memref<1x16x32x128xbf16, #tpu.memory_space<vmem>>, vector<1x1x32x128xbf16>
    %293 = vector.shape_cast %292 : vector<1x1x32x128xbf16> to vector<32x128xbf16>
    %294 = vector.shape_cast %291 : vector<32x128xbf16> to vector<1x1x32x128xbf16>
    tpu.vector_store %arg5[%c0_304, %c13, %c0_305, %c0_306], %294 {strides = array<i32>} : memref<1x16x32x128xbf16, #tpu.memory_space<vmem>>, vector<1x1x32x128xbf16>,
    %cst_307 = arith.constant 0.000000e+00 : f32
    %295 = vector.broadcast %cst_307 : f32 to vector<32x128xf32>
    %c0_308 = arith.constant 0 : index
    %c0_309 = arith.constant 0 : index
    %296 = vector.load %arg6[%c0_308, %c0_309] : memref<32x128xf32, #tpu.memory_space<vmem>>, vector<32x128xf32>
    tpu.vector_store %arg6[%c0_308, %c0_309], %295 {strides = array<i32>} : memref<32x128xf32, #tpu.memory_space<vmem>>, vector<32x128xf32>,
    %c14_i32 = arith.constant 14 : i32
    %297 = arith.addi %0, %c14_i32 : i32
    %c0_i32_310 = arith.constant 0 : i32
    %298 = arith.addi %297, %c0_i32_310 : i32
    %c0_311 = arith.constant 0 : index
    %299 = arith.index_cast %298 : i32 to index
    %c0_312 = arith.constant 0 : index
    %c0_313 = arith.constant 0 : index
    %300 = vector.load %arg2[%c0_311, %299, %c0_312, %c0_313] : memref<1x32x32x32xbf16, #tpu.memory_space<vmem>>, vector<1x1x32x32xbf16>
    %301 = vector.shape_cast %300 : vector<1x1x32x32xbf16> to vector<32x32xbf16>
    %c0_314 = arith.constant 0 : index
    %c0_315 = arith.constant 0 : index
    %302 = vector.load %arg6[%c0_314, %c0_315] : memref<32x128xf32, #tpu.memory_space<vmem>>, vector<32x128xf32>
    %c0_316 = arith.constant 0 : index
    %c0_317 = arith.constant 0 : index
    %c0_318 = arith.constant 0 : index
    %303 = vector.load %arg3[%c0_316, %c0_317, %c0_318] : memref<1x32x128xbf16, #tpu.memory_space<vmem>>, vector<1x32x128xbf16>
    %304 = vector.shape_cast %303 : vector<1x32x128xbf16> to vector<32x128xbf16>
    %cst_319 = arith.constant dense<0.000000e+00> : vector<32x128xf32>
    %305 = tpu.matmul %301, %304, %cst_319 {dimension_numbers = #tpu.dot_dimension_numbers<[1], [0], [0], [1], [0, 0, 1, 1], [], []>} : vector<32x32xbf16>, vector<32x128xbf16>, vector<32x128xf32> -> vector<32x128xf32>
    %306 = arith.addf %302, %305 : vector<32x128xf32>
    %c0_320 = arith.constant 0 : index
    %c0_321 = arith.constant 0 : index
    %307 = vector.load %arg6[%c0_320, %c0_321] : memref<32x128xf32, #tpu.memory_space<vmem>>, vector<32x128xf32>
    tpu.vector_store %arg6[%c0_320, %c0_321], %306 {strides = array<i32>} : memref<32x128xf32, #tpu.memory_space<vmem>>, vector<32x128xf32>,
    %c0_322 = arith.constant 0 : index
    %c0_323 = arith.constant 0 : index
    %308 = vector.load %arg6[%c0_322, %c0_323] : memref<32x128xf32, #tpu.memory_space<vmem>>, vector<32x128xf32>
    %c0_324 = arith.constant 0 : index
    %c0_325 = arith.constant 0 : index
    %309 = vector.load %arg4[%c0_324, %c0_325] : memref<1x128xf32, #tpu.memory_space<vmem>>, vector<1x128xf32>
    %310 = vector.broadcast %309 : vector<1x128xf32> to vector<32x128xf32>
    %311 = arith.addf %308, %310 : vector<32x128xf32>
    %312 = arith.truncf %311 : vector<32x128xf32> to vector<32x128xbf16>
    %c0_326 = arith.constant 0 : index
    %c14 = arith.constant 14 : index
    %c0_327 = arith.constant 0 : index
    %c0_328 = arith.constant 0 : index
    %313 = vector.load %arg5[%c0_326, %c14, %c0_327, %c0_328] : memref<1x16x32x128xbf16, #tpu.memory_space<vmem>>, vector<1x1x32x128xbf16>
    %314 = vector.shape_cast %313 : vector<1x1x32x128xbf16> to vector<32x128xbf16>
    %315 = vector.shape_cast %312 : vector<32x128xbf16> to vector<1x1x32x128xbf16>
    tpu.vector_store %arg5[%c0_326, %c14, %c0_327, %c0_328], %315 {strides = array<i32>} : memref<1x16x32x128xbf16, #tpu.memory_space<vmem>>, vector<1x1x32x128xbf16>,
    %cst_329 = arith.constant 0.000000e+00 : f32
    %316 = vector.broadcast %cst_329 : f32 to vector<32x128xf32>
    %c0_330 = arith.constant 0 : index
    %c0_331 = arith.constant 0 : index
    %317 = vector.load %arg6[%c0_330, %c0_331] : memref<32x128xf32, #tpu.memory_space<vmem>>, vector<32x128xf32>
    tpu.vector_store %arg6[%c0_330, %c0_331], %316 {strides = array<i32>} : memref<32x128xf32, #tpu.memory_space<vmem>>, vector<32x128xf32>,
    %c15_i32 = arith.constant 15 : i32
    %318 = arith.addi %0, %c15_i32 : i32
    %c0_i32_332 = arith.constant 0 : i32
    %319 = arith.addi %318, %c0_i32_332 : i32
    %c0_333 = arith.constant 0 : index
    %320 = arith.index_cast %319 : i32 to index
    %c0_334 = arith.constant 0 : index
    %c0_335 = arith.constant 0 : index
    %321 = vector.load %arg2[%c0_333, %320, %c0_334, %c0_335] : memref<1x32x32x32xbf16, #tpu.memory_space<vmem>>, vector<1x1x32x32xbf16>
    %322 = vector.shape_cast %321 : vector<1x1x32x32xbf16> to vector<32x32xbf16>
    %c0_336 = arith.constant 0 : index
    %c0_337 = arith.constant 0 : index
    %323 = vector.load %arg6[%c0_336, %c0_337] : memref<32x128xf32, #tpu.memory_space<vmem>>, vector<32x128xf32>
    %c0_338 = arith.constant 0 : index
    %c0_339 = arith.constant 0 : index
    %c0_340 = arith.constant 0 : index
    %324 = vector.load %arg3[%c0_338, %c0_339, %c0_340] : memref<1x32x128xbf16, #tpu.memory_space<vmem>>, vector<1x32x128xbf16>
    %325 = vector.shape_cast %324 : vector<1x32x128xbf16> to vector<32x128xbf16>
    %cst_341 = arith.constant dense<0.000000e+00> : vector<32x128xf32>
    %326 = tpu.matmul %322, %325, %cst_341 {dimension_numbers = #tpu.dot_dimension_numbers<[1], [0], [0], [1], [0, 0, 1, 1], [], []>} : vector<32x32xbf16>, vector<32x128xbf16>, vector<32x128xf32> -> vector<32x128xf32>
    %327 = arith.addf %323, %326 : vector<32x128xf32>
    %c0_342 = arith.constant 0 : index
    %c0_343 = arith.constant 0 : index
    %328 = vector.load %arg6[%c0_342, %c0_343] : memref<32x128xf32, #tpu.memory_space<vmem>>, vector<32x128xf32>
    tpu.vector_store %arg6[%c0_342, %c0_343], %327 {strides = array<i32>} : memref<32x128xf32, #tpu.memory_space<vmem>>, vector<32x128xf32>,
    %c0_344 = arith.constant 0 : index
    %c0_345 = arith.constant 0 : index
    %329 = vector.load %arg6[%c0_344, %c0_345] : memref<32x128xf32, #tpu.memory_space<vmem>>, vector<32x128xf32>
    %c0_346 = arith.constant 0 : index
    %c0_347 = arith.constant 0 : index
    %330 = vector.load %arg4[%c0_346, %c0_347] : memref<1x128xf32, #tpu.memory_space<vmem>>, vector<1x128xf32>
    %331 = vector.broadcast %330 : vector<1x128xf32> to vector<32x128xf32>
    %332 = arith.addf %329, %331 : vector<32x128xf32>
    %333 = arith.truncf %332 : vector<32x128xf32> to vector<32x128xbf16>
    %c0_348 = arith.constant 0 : index
    %c15 = arith.constant 15 : index
    %c0_349 = arith.constant 0 : index
    %c0_350 = arith.constant 0 : index
    %334 = vector.load %arg5[%c0_348, %c15, %c0_349, %c0_350] : memref<1x16x32x128xbf16, #tpu.memory_space<vmem>>, vector<1x1x32x128xbf16>
    %335 = vector.shape_cast %334 : vector<1x1x32x128xbf16> to vector<32x128xbf16>
    %336 = vector.shape_cast %333 : vector<32x128xbf16> to vector<1x1x32x128xbf16>
    tpu.vector_store %arg5[%c0_348, %c15, %c0_349, %c0_350], %336 {strides = array<i32>} : memref<1x16x32x128xbf16, #tpu.memory_space<vmem>>, vector<1x1x32x128xbf16>,
    return
  }
  func.func @transform_0(%arg0: i32, %arg1: i32) -> (i32, i32, i32, i32) {
    %c0_i32 = arith.constant 0 : i32
    %c0_i32_0 = arith.constant 0 : i32
    %c0_i32_1 = arith.constant 0 : i32
    %c0_i32_2 = arith.constant 0 : i32
    return %arg0, %c0_i32, %c0_i32_0, %c0_i32_1 : i32, i32, i32, i32
  }
  func.func @transform_1(%arg0: i32, %arg1: i32) -> (i32, i32, i32) {
    %c0_i32 = arith.constant 0 : i32
    %c0_i32_0 = arith.constant 0 : i32
    %c0_i32_1 = arith.constant 0 : i32
    %c0_i32_2 = arith.constant 0 : i32
    return %c0_i32, %c0_i32_0, %c0_i32_1 : i32, i32, i32
  }
  func.func @transform_2(%arg0: i32, %arg1: i32) -> (i32, i32) {
    %c0_i32 = arith.constant 0 : i32
    %c0_i32_0 = arith.constant 0 : i32
    %c0_i32_1 = arith.constant 0 : i32
    return %c0_i32, %c0_i32_0 : i32, i32
  }
  func.func @transform_3(%arg0: i32, %arg1: i32) -> (i32, i32, i32, i32) {
    %c0_i32 = arith.constant 0 : i32
    %c0_i32_0 = arith.constant 0 : i32
    %c0_i32_1 = arith.constant 0 : i32
    return %arg0, %arg1, %c0_i32, %c0_i32_0 : i32, i32, i32, i32
  }
}

</mosaic_0001>

<bundles_post_ra>
// kernel: tpu_custom_call.1
= control target key start
LH: loop header
LB: loop body
LE: loop exit
PB: predicated region body
PF: predicated region fallthrough
CT: control target
= control target key end

     0   :  { %s3369_s0 = inlined_call_operand.hbm [shape: bf16[2,32,32,32], index: 0, kind: input, shape index: {}]   ;;  %s3370_s1 = inlined_call_operand.hbm [shape: bf16[1,32,128], index: 1, kind: input, shape index: {}]   ;;  %s3371_s2 = inlined_call_operand.vmem [shape: f32[1,128], index: 2, kind: input, shape index: {}]   ;;  %s3372_s3 = inlined_call_operand.hbm [shape: bf16[2,32,32,128], index: 3, kind: output, shape index: {}]  }
   0x1   :  { %3383 = sst [smem:[#allocation18_spill]] %s3370_s1 }
   0x2   :  { %3384 = sst [smem:[#allocation19_spill]] %s3372_s3 }
   0x3   :  { %8 = vsyncpa [#allocation4], 0 }
   0x4   :  { %10 = vsyncpa [#allocation4 + $0x1], 0 }
   0x5   :  { %11 = vsyncpa [#allocation7], 0 }
   0x6   :  { %12 = vsyncpa [#allocation5], 0 }
   0x7   :  { %14 = vsyncpa [#allocation5 + $0x1], 0  ;;  %s3018_s12 = smov 0   ;;  %s3020_s13 = smov 0  }
   0x8   :  { %s3022_s14 = smov 0   ;;  %s3024_s15 = smov 0  }
   0x9   :  { %s3026_s16 = smov 0   ;;  %s3028_s17 = smov 0  }
   0xa   :  { %s3030_s18 = smov 0   ;;  %s3032_s19 = smov 0  }
   0xb   :  { %s3034_s20 = smov 0   ;;  %s3036_s21 = smov 0  }
   0xc   :  { %s3038_s22 = smov 0  }
   0xd LB: > { %3385 = sst [smem:[#allocation12_spill]] %s2951_s12  ;;  %s1938_s23 = sadd.s32 4294967295, %s2991_s22   ;;  %s2991_s22 = sphi %s3038_s22, %s20_s22   ;;  %s2987_s21 = sphi %s3036_s21, %s3415_s21   ;;  %s2983_s20 = sphi %s3034_s20, %s3406_s20   ;;  %s2979_s19 = sphi %s3032_s19, %s3414_s19   ;;  %s2975_s18 = sphi %s3030_s18, %s3405_s18   ;;  %s2971_s17 = sphi %s3028_s17, %s3413_s17   ;;  %s2967_s16 = sphi %s3026_s16, %s3412_s16   ;;  %s2963_s15 = sphi %s3024_s15, %s3411_s15   ;;  %s2959_s14 = sphi %s3022_s14, %s3410_s14   ;;  %s2955_s13 = sphi %s3020_s13, %s3409_s13   ;;  %s2951_s12 = sphi %s3018_s12, %s3408_s12  }
   0xe   : > { %3386 = sst [smem:[#allocation13_spill]] %s2983_s20  ;;  %s1939_s24 = sadd.s32 4294967294, %s2991_s22  }
   0xf   : > { %p52_p0 = scmp.ne.s32.totalorder %s2967_s16, %s2963_s15  ;;  %p3074_p1 = scmp.eq.s32.totalorder %s1938_s23, 0 }
  0x10   : > { %p119_p2 = scmp.ne.s32.totalorder %s2959_s14, %s2955_s13  ;;  %p120_p3 = scmp.eq.s32.totalorder %s1938_s23, 3 }
  0x11   : > { %p3082_p4 = por %p3074_p1, %p52_p0  ;;  %p125_p5 = scmp.ne.s32.totalorder %s2955_s13, %s2951_s12 }
  0x12   : > { %p3088_p6 = por %p120_p3, %p119_p2  ;;  %p126_p7 = scmp.eq.s32.totalorder %s1939_s24, 3 }
  0x13   : > { %p1940_p8 = scmp.ge.s32.totalorder %s2991_s22, 1  ;;  %p133_p9 = scmp.lt.s32.totalorder %s2991_s22, 5 }
  0x14   : > { %s3389_s27 = scalar_select %p3088_p6, 1, 0 }
  0x15   : > { %p3094_p10 = por %p126_p7, %p125_p5  ;;  %p3098_p11 = pnand %p1940_p8, %p133_p9 }
  0x16   : > { %3390 = sst [smem:[#allocation14_spill]] %s3389_s27  ;;  %s2993_s6 = smov [#allocation6]  }
  0x17   : > { %s3391_s28 = scalar_select %p3094_p10, 1, 0 }
  0x18   : > { %s3394_s1 = sld [smem:[#allocation18_spill]]  ;;  %p2680_p12 = pneg %p3098_p11 }
  0x19   : > { %3392 = sst [smem:[#allocation15_spill]] %s3391_s28  ;;  %s146_s7 = sshll.u32 %s2993_s6, 4  ;;  %s147_s7 = int_to_ptr.vmem [resolvable:$true] %s146_s7 }
  0x1a   : > { %p2681_p13 = pnand %p2680_p12, %p3074_p1  ;;  %s3373_s8 = smov 64  }
  0x1b   : > { %s3374_s9 = smov 4   ;;  %s29_s10 = sadd.s32 1, %s2983_s20 }
  0x1c   : > { %s32_s11 = sadd.s32 1, %s2987_s21  ;;  %p30_p0 = scmp.ge.s32.totalorder %s29_s10, 2 }
  0x1d   : > { %s39_s15 = sadd.s32 1, %s2971_s17  ;;  %p46_p2 = scmp.ne.s32.totalorder %s2971_s17, %s2967_s16 }
  0x1e   : > { %s144_s5 = sshll.u32 %s3394_s1, 4  ;;  %p47_p3 = scmp.eq.s32.totalorder %s2991_s22, 0  ;;  %s145_s5 = int_to_ptr.hbm [resolvable:$true] %s144_s5 }
  0x1f   : > { %2683 = dma.hbm_to_vmem [thread:$0]  (!%p2681_p13), %s145_s5, 256, %s147_s7, [#allocation7], %s3373_s8, %s3373_s8, %s3374_s9  }
  0x20   : > { %s3417_s10 = smov (%p30_p0, %s29_s10), 0  ;;  %s3419_s11 = smov (!%p30_p0, %s32_s11), %s2987_s21 }
  0x21   : > { %3395 = sst [smem:[#allocation16_spill]] %s3417_s10  ;;  %p3121_p5 = por %p47_p3, %p46_p2 }
  0x22   : > { %s105_s24 = ssub.s32 %s2983_s20, %s3417_s10  ;;  %p34_p7 = scmp.ge.s32.totalorder %s3419_s11, 2 }
  0x23   : > { %s109_s30 = sadd.s32 1, %s2959_s14  ;;  %p2693_p8 = scmp.lt.s32.totalorder %s2991_s22, 4 }
  0x24   : > { %s163_s4 = sand.u32 1, %s2971_s17   ;;  %s3421_s11 = smov (%p34_p7, %s3419_s11), 0 }
  0x25   : > { %3397 = sst [smem:[#allocation17_spill]] %s3421_s11  ;;  %s1943_s5 = sshll.u32 %s163_s4, 9 }
  0x26   : > { %s36_s6 = ssub.s32 %s2987_s21, %s3421_s11  ;;  %s2398_s8 = sshll.u32 %s2987_s21, 9 }
  0x27   : > { %p37_p9 = scmp.eq.s32.totalorder %s36_s6, 0  ;;  %s106_s7 = sor.u32 %s105_s24, %s36_s6 }
  0x28   : > { %p107_p12 = scmp.eq.s32.totalorder %s106_s7, 0  ;;  %s172_s28 = scalar_lea.hbm %s3369_s0, %s2398_s8 }
  0x29   : > { %s3136_s9 = scalar_select %p37_p9, %s2971_s17, %s39_s15  }
  0x2a   : > { %s3139_s1 = scalar_select %p107_p12, %s2959_s14, %s109_s30  }
  0x2b   : > { %s167_s12 = scalar_lea.vmem [#allocation3], %s1943_s5  ;;  %s173_s3 = sshll.u32 %s172_s28, 4  ;;  %s174_s3 = int_to_ptr.hbm [resolvable:$true] %s173_s3 }
  0x2c   : > { %s175_s27 = sshll.u32 %s167_s12, 4  ;;  %p2685_p13 = pnand %p2693_p8, %p3121_p5  ;;  %s176_s27 = int_to_ptr.vmem [resolvable:$true] %s175_s27 }
  0x2d   : > { %s164_s11 = scalar_lea.sflag [#allocation4], %s163_s4  ;;  %s3398_s24 = smov 4  }
  0x2e   : > { %s3399_s6 = smov 64   ;;  %187 = sbr.rel (%p3098_p11) target bundleno = 325 (0x145), region = 32 }
  0x2f   : > { %2687 = dma.hbm_to_vmem [thread:$0]  (!%p2685_p13), %s174_s3, 8192, %s176_s27, %s164_s11, %s3399_s6, %s3399_s6, %s3398_s24  }
  0x30   : > { %s189_s20 = sand.u32 (!%p3098_p11), 1, %s2967_s16  }
  0x31   : > { %s1947_s8 = sshll.u32 (!%p3098_p11), %s189_s20, 9  ;;  %s190_s10 = scalar_lea.sflag (!%p3098_p11), [#allocation4], %s189_s20 }
  0x32   : > { %s193_s12 = scalar_lea.vmem (!%p3098_p11), [#allocation3], %s1947_s8 }
  0x33   : > { %2938 = dma.done.wait (%p3082_p4), %s190_s10, 8192  }
  0x34   : > { %2940 = vsyncadd (%p3082_p4), %s190_s10, 4294959104 }
  0x35   : > { %2942 = dma.done.wait (%p3074_p1), [#allocation7], 256  }
  0x36   : > { %2944 = vsyncadd (%p3074_p1), [#allocation7], 4294967040  ;;  %s2400_s3 = sshll.u32 %s2975_s18, 8  ;;  %v2404_v0 = vld [vmem:[#allocation6 + $0x8] sm:$0xff]  ;;  %v2403_v4 = vld [vmem:[#allocation6] sm:$0xff]  ;;  %vm266_vm0 = vcmask 261120  }
  0x37   : > { %v2409_v1 = vld [vmem:[#allocation6 + $0x8] sm:$0xff]  ;;  %279 = vmatpush.bf16.msra.mxu0 %v2404_v0  ;;  %v2408_v5 = vld [vmem:[#allocation6] sm:$0xff]  ;;  %s3163_s27 = scalar_lea.vmem %s193_s12, %s2400_s3 [#allocation3]  ;;  %s219_s25 = sand.u32 1, %s2955_s13  }
  0x38   : > { %v2414_v2 = vld [vmem:[#allocation6 + $0x8] sm:$0xff]  ;;  %374 = vmatpush.bf16.msra.mxu1 %v2409_v1  ;;  %v2413_v6 = vld [vmem:[#allocation6] sm:$0xff]  ;;  %v2406_v11 = vld [vmem:[%s3163_s27 + $0x10] sm:$0xff]  ;;  %s1949_s15 = sshll.u32 %s219_s25, 8  ;;  %s2394_s26 = sshll.u32 %s2979_s19, 7 }
  0x39   : > { %v2419_v3 = vld [vmem:[#allocation6 + $0x8] sm:$0xff]  ;;  %470 = vmatpush.bf16.msra.mxu2 %v2414_v2  ;;  %v2418_v7 = vld [vmem:[#allocation6] sm:$0xff]  ;;  %v2416_v13 = vld [vmem:[%s3163_s27 + $0x30] sm:$0xff]  ;;  %s3244_s7 = scalar_lea.vmem [#allocation8], %s1949_s15  ;;  %s3400_s19 = sld [smem:[#allocation19_spill]] }
  0x3a   : > { %566 = vmatpush.bf16.msra.mxu3 %v2419_v3  ;;  %v2434_v8 = vld [vmem:[#allocation6 + $0x8] sm:$0xff]  ;;  %v2401_v10 = vld [vmem:[%s3163_s27] sm:$0xff]  ;;  %v2407_v25 = vld [vmem:[%s3163_s27 + $0x18] sm:$0xff]  ;;  %s1776_s30 = sshll.u32 %s3244_s7, 4  ;;  %s1761_s24 = scalar_lea.sflag [#allocation5], %s219_s25  ;;  %s1777_s30 = int_to_ptr.vmem [resolvable:$true] %s1776_s30 }
  0x3b   : > { %v2439_v9 = vld [vmem:[#allocation6 + $0x8] sm:$0xff]  ;;  %280 = vmatpush.bf16.msra.mxu0 %v2403_v4  ;;  %v2411_v12 = vld [vmem:[%s3163_s27 + $0x20] sm:$0xff]  ;;  %v2417_v27 = vld [vmem:[%s3163_s27 + $0x38] sm:$0xff] }
  0x3c   : > { %375 = vmatpush.bf16.msra.mxu1 %v2408_v5  ;;  %v2424_v14 = vld [vmem:[#allocation6 + $0x8] sm:$0xff]  ;;  %v2433_v16 = vld [vmem:[#allocation6] sm:$0xff]  ;;  %v2426_v33 = vld [vmem:[%s3163_s27 + $0x50] sm:$0xff] }
  0x3d   : > { %471 = vmatpush.bf16.msra.mxu2 %v2413_v6  ;;  %v2429_v15 = vld [vmem:[#allocation6 + $0x8] sm:$0xff]  ;;  %v2438_v17 = vld [vmem:[#allocation6] sm:$0xff]  ;;  %v2436_v35 = vld [vmem:[%s3163_s27 + $0x70] sm:$0xff] }
  0x3e   : > { %567 = vmatpush.bf16.msra.mxu3 %v2418_v7  ;;  %1969 = vmatmul.msk.bf16.vlgmr.msra.gmra.mxu0 %vm266_vm0, %v2401_v10  ;;  %v2423_v18 = vld [vmem:[#allocation6] sm:$0xff]  ;;  %v2454_v20 = vld [vmem:[#allocation6 + $0x8] sm:$0xff]  ;;  %v2427_v41 = vld [vmem:[%s3163_s27 + $0x58] sm:$0xff] }
  0x3f   : > { %1993 = vmatmul.msk.bf16.vlgmr.msra.gmra.mxu1 %vm266_vm0, %v2406_v11  ;;  %v2428_v19 = vld [vmem:[#allocation6] sm:$0xff]  ;;  %v2459_v21 = vld [vmem:[#allocation6 + $0x8] sm:$0xff]  ;;  %662 = vmatpush.bf16.msrb.mxu0 %v2424_v14  ;;  %v2437_v43 = vld [vmem:[%s3163_s27 + $0x78] sm:$0xff]  ;;  %s3401_s23 = smov %s3400_s19 }
  0x40   : > { %2021 = vmatmul.msk.bf16.vlgmr.msra.gmra.mxu2 %vm266_vm0, %v2411_v12  ;;  %758 = vmatpush.bf16.msrb.mxu1 %v2429_v15  ;;  %v2444_v22 = vld [vmem:[#allocation6 + $0x8] sm:$0xff]  ;;  %v2453_v28 = vld [vmem:[#allocation6] sm:$0xff]  ;;  %v2446_v49 = vld [vmem:[%s3163_s27 + $0x90] sm:$0xff]  ;;  %s2885_s12 = scalar_lea.hbm %s3401_s23, 1024 }
  0x41   : > { %854 = vmatpush.bf16.msrb.mxu2 %v2434_v8  ;;  %2049 = vmatmul.msk.bf16.vlgmr.msra.gmra.mxu3 %vm266_vm0, %v2416_v13  ;;  %v2449_v23 = vld [vmem:[#allocation6 + $0x8] sm:$0xff]  ;;  %v2458_v29 = vld [vmem:[#allocation6] sm:$0xff]  ;;  %v2456_v51 = vld [vmem:[%s3163_s27 + $0xb0] sm:$0xff] }
  0x42   : > { %950 = vmatpush.bf16.msrb.mxu3 %v2439_v9  ;;  %v2402_v24 = vld [vmem:[%s3163_s27 + $0x8] sm:$0xff]  ;;  %v2443_v30 = vld [vmem:[#allocation6] sm:$0xff]  ;;  %v2447_v53 = vld [vmem:[%s3163_s27 + $0x98] sm:$0xff] }
  0x43   : > { %663 = vmatpush.bf16.msrb.mxu0 %v2423_v18  ;;  %v2412_v26 = vld [vmem:[%s3163_s27 + $0x28] sm:$0xff]  ;;  %v2448_v31 = vld [vmem:[#allocation6] sm:$0xff]  ;;  %v2457_v55 = vld [vmem:[%s3163_s27 + $0xb8] sm:$0xff] }
  0x44   : > { %759 = vmatpush.bf16.msrb.mxu1 %v2428_v19  ;;  %v2421_v32 = vld [vmem:[%s3163_s27 + $0x40] sm:$0xff]  ;;  %v2474_v36 = vld [vmem:[#allocation6 + $0x8] sm:$0xff]  ;;  %v2466_v57 = vld [vmem:[%s3163_s27 + $0xd0] sm:$0xff] }
  0x45   : > { %855 = vmatpush.bf16.msrb.mxu2 %v2433_v16  ;;  %v2431_v34 = vld [vmem:[%s3163_s27 + $0x60] sm:$0xff]  ;;  %v2479_v37 = vld [vmem:[#allocation6 + $0x8] sm:$0xff]  ;;  %v2476_v59 = vld [vmem:[%s3163_s27 + $0xf0] sm:$0xff] }
  0x46   : > { %951 = vmatpush.bf16.msrb.mxu3 %v2438_v17  ;;  %v2464_v38 = vld [vmem:[#allocation6 + $0x8] sm:$0xff]  ;;  %v2473_v44 = vld [vmem:[#allocation6] sm:$0xff]  ;;  %v2467_v61 = vld [vmem:[%s3163_s27 + $0xd8] sm:$0xff] }
  0x47   : > { %1046 = vmatpush.bf16.msra.mxu0 %v2444_v22  ;;  %v2469_v39 = vld [vmem:[#allocation6 + $0x8] sm:$0xff]  ;;  %v2478_v45 = vld [vmem:[#allocation6] sm:$0xff]  ;;  %v2477_v63 = vld [vmem:[%s3163_s27 + $0xf8] sm:$0xff] }
  0x48   : > { %1142 = vmatpush.bf16.msra.mxu1 %v2449_v23  ;;  %v2422_v40 = vld [vmem:[%s3163_s27 + $0x48] sm:$0xff]  ;;  %v2463_v46 = vld [vmem:[#allocation6] sm:$0xff] }
  0x49   : > { %1238 = vmatpush.bf16.msra.mxu2 %v2454_v20  ;;  %v2432_v42 = vld [vmem:[%s3163_s27 + $0x68] sm:$0xff]  ;;  %v2468_v47 = vld [vmem:[#allocation6] sm:$0xff] }
  0x4a   : > { %1334 = vmatpush.bf16.msra.mxu3 %v2459_v21  ;;  %v2441_v48 = vld [vmem:[%s3163_s27 + $0x80] sm:$0xff]  ;;  %v2442_v52 = vld [vmem:[%s3163_s27 + $0x88] sm:$0xff] }
  0x4b   : > { %1047 = vmatpush.bf16.msra.mxu0 %v2443_v30  ;;  %v2451_v50 = vld [vmem:[%s3163_s27 + $0xa0] sm:$0xff]  ;;  %v2452_v54 = vld [vmem:[%s3163_s27 + $0xa8] sm:$0xff] }
  0x4c   : > { %1143 = vmatpush.bf16.msra.mxu1 %v2448_v31  ;;  %v2461_v56 = vld [vmem:[%s3163_s27 + $0xc0] sm:$0xff]  ;;  %v2462_v60 = vld [vmem:[%s3163_s27 + $0xc8] sm:$0xff] }
  0x4d   : > { %1239 = vmatpush.bf16.msra.mxu2 %v2453_v28  ;;  %v2471_v58 = vld [vmem:[%s3163_s27 + $0xe0] sm:$0xff]  ;;  %v2472_v62 = vld [vmem:[%s3163_s27 + $0xe8] sm:$0xff]  ;;  %s2480_s27 = sshll.u32 %s2975_s18, 6 }
  0x4e   : > { %1970 = vmatmul.msk.bf16.gmra.mxu0 %vm266_vm0, %v2402_v24  ;;  %1335 = vmatpush.bf16.msra.mxu3 %v2458_v29  ;;  %v2789_v2 = vld [vmem:[%s3371_s2] ss:$0 sm:$0xff]  ;;  %s1773_s28 = sadd.s32 %s2480_s27, %s2394_s26 }
  0x4f   : > { %1994 = vmatmul.msk.bf16.gmra.mxu1 %vm266_vm0, %v2407_v25  ;;  %v2790_v3 = vld [vmem:[%s3371_s2] ss:$0 sm:$0xff]  ;;  %s2395_s29 = sshll.u32 %s1773_s28, 2 }
  0x50   : > { %2022 = vmatmul.msk.bf16.gmra.mxu2 %vm266_vm0, %v2412_v26  ;;  %v2791_v14 = vld [vmem:[%s3371_s2] ss:$0 sm:$0xff]  ;;  %s1775_s15 = scalar_lea.hbm %s3400_s19, %s2395_s29 }
  0x51   : > { %2050 = vmatmul.msk.bf16.gmra.mxu3 %vm266_vm0, %v2417_v27  ;;  %v2792_v15 = vld [vmem:[%s3371_s2] ss:$0 sm:$0xff]  ;;  %s1778_s4 = sshll.u32 %s1775_s15, 4  ;;  %s1779_s4 = int_to_ptr.hbm [resolvable:$true] %s1778_s4 }
  0x52   : > { %s2879_s6 = sshra.s32 %s1779_s4, 4  ;;  %s2880_s6 = int_to_ptr.hbm [resolvable:$true] %s2879_s6 }
  0x53   : > { %s2881_s20 = scalar_lea.hbm %s2880_s6, 256  ;;  %p2886_p0 = scmp.lt.s32.totalorder %s2880_s6, %s3401_s23 }
  0x54   : > { %p2882_p1 = scmp.ne.s32.totalorder %s2880_s6, %s2881_s20  ;;  %p2887_p2 = scmp.lt.s32.totalorder %s2885_s12, %s2881_s20 }
  0x56   : > { %p2883_p4 = pnand %p2882_p1, %p3088_p6  ;;  %p2888_p3 = por %p2887_p2, %p2886_p0 }
  0x58   : > { %p2884_p11 = pneg %p2883_p4 }
  0x5a   : > { %p2889_p5 = pnand %p2888_p3, %p2884_p11 }
  0x5e   : > { %2077 = vmatmul.msk.bf16.vlgmr.msrb.gmra.mxu0 %vm266_vm0, %v2421_v32 }
  0x5f   : > { %2105 = vmatmul.msk.bf16.vlgmr.msrb.gmra.mxu1 %vm266_vm0, %v2426_v33  ;;  %1430 = vmatpush.bf16.msrb.mxu0 %v2464_v38 }
  0x60   : > { %2133 = vmatmul.msk.bf16.vlgmr.msrb.gmra.mxu2 %vm266_vm0, %v2431_v34  ;;  %1526 = vmatpush.bf16.msrb.mxu1 %v2469_v39 }
  0x61   : > { %2161 = vmatmul.msk.bf16.vlgmr.msrb.gmra.mxu3 %vm266_vm0, %v2436_v35  ;;  %1622 = vmatpush.bf16.msrb.mxu2 %v2474_v36 }
  0x62   : > { %1718 = vmatpush.bf16.msrb.mxu3 %v2479_v37 }
  0x63   : > { %1431 = vmatpush.bf16.msrb.mxu0 %v2463_v46  ;;  %v2793_v46 = vld [vmem:[%s3371_s2] ss:$0 sm:$0xff] }
  0x64   : > { %1527 = vmatpush.bf16.msrb.mxu1 %v2468_v47  ;;  %v2794_v47 = vld [vmem:[%s3371_s2] ss:$0 sm:$0xff] }
  0x65   : > { %1623 = vmatpush.bf16.msrb.mxu2 %v2473_v44 }
  0x66   : > { %1719 = vmatpush.bf16.msrb.mxu3 %v2478_v45 }
  0x6e   : > { %2078 = vmatmul.msk.bf16.gmra.mxu0 %vm266_vm0, %v2422_v40 }
  0x6f   : > { %2106 = vmatmul.msk.bf16.gmra.mxu1 %vm266_vm0, %v2427_v41 }
  0x70   : > { %2134 = vmatmul.msk.bf16.gmra.mxu2 %vm266_vm0, %v2432_v42 }
  0x71   : > { %2162 = vmatmul.msk.bf16.gmra.mxu3 %vm266_vm0, %v2437_v43 }
  0x7e   : > { %2189 = vmatmul.msk.bf16.vlgmr.msra.gmra.mxu0 %vm266_vm0, %v2441_v48 }
  0x7f   : > { %2217 = vmatmul.msk.bf16.vlgmr.msra.gmra.mxu1 %vm266_vm0, %v2446_v49 }
  0x80   : > { %2245 = vmatmul.msk.bf16.vlgmr.msra.gmra.mxu2 %vm266_vm0, %v2451_v50 }
  0x81   : > { %2273 = vmatmul.msk.bf16.vlgmr.msra.gmra.mxu3 %vm266_vm0, %v2456_v51 }
  0x8e   : > { %2190 = vmatmul.msk.bf16.gmra.mxu0 %vm266_vm0, %v2442_v52 }
  0x8f   : > { %2218 = vmatmul.msk.bf16.gmra.mxu1 %vm266_vm0, %v2447_v53 }
  0x90   : > { %2246 = vmatmul.msk.bf16.gmra.mxu2 %vm266_vm0, %v2452_v54 }
  0x91   : > { %2274 = vmatmul.msk.bf16.gmra.mxu3 %vm266_vm0, %v2457_v55 }
  0x9e   : > { %2301 = vmatmul.msk.bf16.vlgmr.msrb.gmra.mxu0 %vm266_vm0, %v2461_v56 }
  0x9f   : > { %2329 = vmatmul.msk.bf16.vlgmr.msrb.gmra.mxu1 %vm266_vm0, %v2466_v57 }
  0xa0   : > { %2357 = vmatmul.msk.bf16.vlgmr.msrb.gmra.mxu2 %vm266_vm0, %v2471_v58  ;;  %v2795_v58 = vld [vmem:[%s3371_s2] ss:$0 sm:$0xff] }
  0xa1   : > { %2385 = vmatmul.msk.bf16.vlgmr.msrb.gmra.mxu3 %vm266_vm0, %v2476_v59  ;;  %v2796_v59 = vld [vmem:[%s3371_s2] ss:$0 sm:$0xff] }
  0xae   : > { %2302 = vmatmul.msk.bf16.gmra.mxu0 %vm266_vm0, %v2462_v60 }
  0xaf   : > { %2330 = vmatmul.msk.bf16.gmra.mxu1 %vm266_vm0, %v2467_v61 }
  0xb0   : > { %2358 = vmatmul.msk.bf16.gmra.mxu2 %vm266_vm0, %v2472_v62 }
  0xb1   : > { %2386 = vmatmul.msk.bf16.gmra.mxu3 %vm266_vm0, %v2477_v63 }
  0xbb   : > { %v282_v0 = vpop.f32.mrf.mxu0 }
  0xbc   : > { %v377_v1 = vpop.f32.mrf.mxu1  ;;  %v308_v8 = vadd.f32 %v2789_v2, %v282_v0 }
  0xbd   : > { %v403_v9 = vadd.f32 %v2790_v3, %v377_v1 }
  0xc3   : > { %v473_v4 = vpop.f32.mrf.mxu2  ;;  %v284_v6 = vpop.f32.mrf.mxu0 }
  0xc4   : > { %v569_v5 = vpop.f32.mrf.mxu3  ;;  %v379_v7 = vpop.f32.mrf.mxu1  ;;  %v309_v10 = vadd.f32 %v2789_v2, %v284_v6  ;;  %v499_v18 = vadd.f32 %v2791_v14, %v473_v4 }
  0xc5   : > { %v404_v11 = vadd.f32 %v2790_v3, %v379_v7  ;;  %v595_v19 = vadd.f32 %v2792_v15, %v569_v5 }
  0xc6   : > { %v2484_v12 = vpack.c.bf16 %v309_v10, %v308_v8 }
  0xc7   : > { %v2494_v13 = vpack.c.bf16 %v404_v11, %v403_v9 }
  0xc8   : > { %2485 = vst [vmem:[%s3244_s7] sm:$0xff] %v2484_v12  }
  0xc9   : > { %2642 = vst [vmem:[%s3244_s7 + $0x10] sm:$0xff] %v2494_v13  }
  0xcb   : > { %v475_v16 = vpop.f32.mrf.mxu2  ;;  %v287_v22 = vpop.f32.mrf.mxu0 }
  0xcc   : > { %v571_v17 = vpop.f32.mrf.mxu3  ;;  %v500_v20 = vadd.f32 %v2791_v14, %v475_v16  ;;  %v382_v23 = vpop.f32.mrf.mxu1  ;;  %v310_v30 = vadd.f32 %v2789_v2, %v287_v22 }
  0xcd   : > { %v596_v21 = vadd.f32 %v2792_v15, %v571_v17  ;;  %v405_v31 = vadd.f32 %v2790_v3, %v382_v23 }
  0xce   : > { %v2504_v24 = vpack.c.bf16 %v500_v20, %v499_v18 }
  0xcf   : > { %v2514_v25 = vpack.c.bf16 %v596_v21, %v595_v19 }
  0xd0   : > { %2644 = vst [vmem:[%s3244_s7 + $0x20] sm:$0xff] %v2504_v24  }
  0xd1   : > { %2646 = vst [vmem:[%s3244_s7 + $0x30] sm:$0xff] %v2514_v25  }
  0xd3   : > { %v478_v26 = vpop.f32.mrf.mxu2  ;;  %v289_v28 = vpop.f32.mrf.mxu0 }
  0xd4   : > { %v574_v27 = vpop.f32.mrf.mxu3  ;;  %v384_v29 = vpop.f32.mrf.mxu1  ;;  %v311_v32 = vadd.f32 %v2789_v2, %v289_v28  ;;  %v501_v38 = vadd.f32 %v2791_v14, %v478_v26  ;;  %v2797_v26 = vld [vmem:[%s3371_s2] ss:$0 sm:$0xff] }
  0xd5   : > { %v406_v33 = vadd.f32 %v2790_v3, %v384_v29  ;;  %v597_v39 = vadd.f32 %v2792_v15, %v574_v27  ;;  %v2798_v27 = vld [vmem:[%s3371_s2] ss:$0 sm:$0xff] }
  0xd6   : > { %v2489_v34 = vpack.c.bf16 %v311_v32, %v310_v30 }
  0xd7   : > { %v2499_v35 = vpack.c.bf16 %v406_v33, %v405_v31 }
  0xd8   : > { %2641 = vst [vmem:[%s3244_s7 + $0x8] sm:$0xff] %v2489_v34  }
  0xd9   : > { %2643 = vst [vmem:[%s3244_s7 + $0x18] sm:$0xff] %v2499_v35  }
  0xdb   : > { %v480_v36 = vpop.f32.mrf.mxu2  ;;  %v665_v42 = vpop.f32.mrf.mxu0 }
  0xdc   : > { %v576_v37 = vpop.f32.mrf.mxu3  ;;  %v502_v40 = vadd.f32 %v2791_v14, %v480_v36  ;;  %v761_v43 = vpop.f32.mrf.mxu1  ;;  %v691_v52 = vadd.f32 %v2793_v46, %v665_v42 }
  0xdd   : > { %v598_v41 = vadd.f32 %v2792_v15, %v576_v37  ;;  %v787_v53 = vadd.f32 %v2794_v47, %v761_v43 }
  0xde   : > { %v2509_v44 = vpack.c.bf16 %v502_v40, %v501_v38  ;;  %v2799_v38 = vld [vmem:[%s3371_s2] ss:$0 sm:$0xff] }
  0xdf   : > { %v2519_v45 = vpack.c.bf16 %v598_v41, %v597_v39  ;;  %v2800_v39 = vld [vmem:[%s3371_s2] ss:$0 sm:$0xff] }
  0xe0   : > { %2645 = vst [vmem:[%s3244_s7 + $0x28] sm:$0xff] %v2509_v44  }
  0xe1   : > { %2647 = vst [vmem:[%s3244_s7 + $0x38] sm:$0xff] %v2519_v45  }
  0xe3   : > { %v857_v48 = vpop.f32.mrf.mxu2  ;;  %v667_v50 = vpop.f32.mrf.mxu0 }
  0xe4   : > { %v953_v49 = vpop.f32.mrf.mxu3  ;;  %v763_v51 = vpop.f32.mrf.mxu1  ;;  %v692_v54 = vadd.f32 %v2793_v46, %v667_v50  ;;  %v883_v62 = vadd.f32 %v2795_v58, %v857_v48 }
  0xe5   : > { %v788_v55 = vadd.f32 %v2794_v47, %v763_v51  ;;  %v979_v63 = vadd.f32 %v2796_v59, %v953_v49 }
  0xe6   : > { %v2524_v56 = vpack.c.bf16 %v692_v54, %v691_v52 }
  0xe7   : > { %v2534_v57 = vpack.c.bf16 %v788_v55, %v787_v53 }
  0xe8   : > { %2648 = vst [vmem:[%s3244_s7 + $0x40] sm:$0xff] %v2524_v56  }
  0xe9   : > { %2650 = vst [vmem:[%s3244_s7 + $0x50] sm:$0xff] %v2534_v57  }
  0xeb   : > { %v859_v60 = vpop.f32.mrf.mxu2  ;;  %v670_v2 = vpop.f32.mrf.mxu0 }
  0xec   : > { %v955_v61 = vpop.f32.mrf.mxu3  ;;  %v884_v0 = vadd.f32 %v2795_v58, %v859_v60  ;;  %v766_v3 = vpop.f32.mrf.mxu1  ;;  %v693_v10 = vadd.f32 %v2793_v46, %v670_v2 }
  0xed   : > { %v980_v1 = vadd.f32 %v2796_v59, %v955_v61  ;;  %v789_v11 = vadd.f32 %v2794_v47, %v766_v3 }
  0xee   : > { %v2544_v4 = vpack.c.bf16 %v884_v0, %v883_v62 }
  0xef   : > { %v2554_v5 = vpack.c.bf16 %v980_v1, %v979_v63 }
  0xf0   : > { %2652 = vst [vmem:[%s3244_s7 + $0x60] sm:$0xff] %v2544_v4  }
  0xf1   : > { %2654 = vst [vmem:[%s3244_s7 + $0x70] sm:$0xff] %v2554_v5  }
  0xf3   : > { %v862_v6 = vpop.f32.mrf.mxu2  ;;  %v672_v8 = vpop.f32.mrf.mxu0 }
  0xf4   : > { %v958_v7 = vpop.f32.mrf.mxu3  ;;  %v768_v9 = vpop.f32.mrf.mxu1  ;;  %v694_v12 = vadd.f32 %v2793_v46, %v672_v8  ;;  %v885_v18 = vadd.f32 %v2795_v58, %v862_v6  ;;  %v2801_v6 = vld [vmem:[%s3371_s2] ss:$0 sm:$0xff] }
  0xf5   : > { %v790_v13 = vadd.f32 %v2794_v47, %v768_v9  ;;  %v981_v19 = vadd.f32 %v2796_v59, %v958_v7  ;;  %v2802_v7 = vld [vmem:[%s3371_s2] ss:$0 sm:$0xff] }
  0xf6   : > { %v2529_v14 = vpack.c.bf16 %v694_v12, %v693_v10 }
  0xf7   : > { %v2539_v15 = vpack.c.bf16 %v790_v13, %v789_v11 }
  0xf8   : > { %2649 = vst [vmem:[%s3244_s7 + $0x48] sm:$0xff] %v2529_v14  }
  0xf9   : > { %2651 = vst [vmem:[%s3244_s7 + $0x58] sm:$0xff] %v2539_v15  }
  0xfb   : > { %v864_v16 = vpop.f32.mrf.mxu2  ;;  %v1049_v22 = vpop.f32.mrf.mxu0 }
  0xfc   : > { %v960_v17 = vpop.f32.mrf.mxu3  ;;  %v886_v20 = vadd.f32 %v2795_v58, %v864_v16  ;;  %v1145_v23 = vpop.f32.mrf.mxu1  ;;  %v1075_v32 = vadd.f32 %v2797_v26, %v1049_v22 }
  0xfd   : > { %v982_v21 = vadd.f32 %v2796_v59, %v960_v17  ;;  %v1171_v33 = vadd.f32 %v2798_v27, %v1145_v23 }
  0xfe   : > { %v2549_v24 = vpack.c.bf16 %v886_v20, %v885_v18  ;;  %v2803_v18 = vld [vmem:[%s3371_s2] ss:$0 sm:$0xff] }
  0xff   : > { %v2559_v25 = vpack.c.bf16 %v982_v21, %v981_v19  ;;  %v2804_v19 = vld [vmem:[%s3371_s2] ss:$0 sm:$0xff] }
 0x100   : > { %2653 = vst [vmem:[%s3244_s7 + $0x68] sm:$0xff] %v2549_v24  }
 0x101   : > { %2655 = vst [vmem:[%s3244_s7 + $0x78] sm:$0xff] %v2559_v25  }
 0x103   : > { %v1241_v28 = vpop.f32.mrf.mxu2  ;;  %v1051_v30 = vpop.f32.mrf.mxu0 }
 0x104   : > { %v1337_v29 = vpop.f32.mrf.mxu3  ;;  %v1147_v31 = vpop.f32.mrf.mxu1  ;;  %v1076_v34 = vadd.f32 %v2797_v26, %v1051_v30  ;;  %v1267_v42 = vadd.f32 %v2799_v38, %v1241_v28 }
 0x105   : > { %v1172_v35 = vadd.f32 %v2798_v27, %v1147_v31  ;;  %v1363_v43 = vadd.f32 %v2800_v39, %v1337_v29 }
 0x106   : > { %v2564_v36 = vpack.c.bf16 %v1076_v34, %v1075_v32 }
 0x107   : > { %v2574_v37 = vpack.c.bf16 %v1172_v35, %v1171_v33 }
 0x108   : > { %2656 = vst [vmem:[%s3244_s7 + $0x80] sm:$0xff] %v2564_v36  }
 0x109   : > { %2658 = vst [vmem:[%s3244_s7 + $0x90] sm:$0xff] %v2574_v37  }
 0x10b   : > { %v1243_v40 = vpop.f32.mrf.mxu2  ;;  %v1054_v46 = vpop.f32.mrf.mxu0 }
 0x10c   : > { %v1339_v41 = vpop.f32.mrf.mxu3  ;;  %v1268_v44 = vadd.f32 %v2799_v38, %v1243_v40  ;;  %v1150_v47 = vpop.f32.mrf.mxu1  ;;  %v1077_v54 = vadd.f32 %v2797_v26, %v1054_v46 }
 0x10d   : > { %v1364_v45 = vadd.f32 %v2800_v39, %v1339_v41  ;;  %v1173_v55 = vadd.f32 %v2798_v27, %v1150_v47 }
 0x10e   : > { %v2584_v48 = vpack.c.bf16 %v1268_v44, %v1267_v42 }
 0x10f   : > { %v2594_v49 = vpack.c.bf16 %v1364_v45, %v1363_v43 }
 0x110   : > { %2660 = vst [vmem:[%s3244_s7 + $0xa0] sm:$0xff] %v2584_v48  }
 0x111   : > { %2662 = vst [vmem:[%s3244_s7 + $0xb0] sm:$0xff] %v2594_v49  }
 0x113   : > { %v1246_v50 = vpop.f32.mrf.mxu2  ;;  %v1056_v52 = vpop.f32.mrf.mxu0 }
 0x114   : > { %v1342_v51 = vpop.f32.mrf.mxu3  ;;  %v1152_v53 = vpop.f32.mrf.mxu1  ;;  %v1078_v56 = vadd.f32 %v2797_v26, %v1056_v52  ;;  %v1269_v62 = vadd.f32 %v2799_v38, %v1246_v50 }
 0x115   : > { %v1174_v57 = vadd.f32 %v2798_v27, %v1152_v53  ;;  %v1365_v63 = vadd.f32 %v2800_v39, %v1342_v51 }
 0x116   : > { %v2569_v58 = vpack.c.bf16 %v1078_v56, %v1077_v54 }
 0x117   : > { %v2579_v59 = vpack.c.bf16 %v1174_v57, %v1173_v55 }
 0x118   : > { %2657 = vst [vmem:[%s3244_s7 + $0x88] sm:$0xff] %v2569_v58  }
 0x119   : > { %2659 = vst [vmem:[%s3244_s7 + $0x98] sm:$0xff] %v2579_v59  }
 0x11b   : > { %v1248_v60 = vpop.f32.mrf.mxu2  ;;  %v1433_v2 = vpop.f32.mrf.mxu0 }
 0x11c   : > { %v1344_v61 = vpop.f32.mrf.mxu3  ;;  %v1270_v0 = vadd.f32 %v2799_v38, %v1248_v60  ;;  %v1529_v3 = vpop.f32.mrf.mxu1  ;;  %v1459_v12 = vadd.f32 %v2801_v6, %v1433_v2 }
 0x11d   : > { %v1366_v1 = vadd.f32 %v2800_v39, %v1344_v61  ;;  %v1555_v13 = vadd.f32 %v2802_v7, %v1529_v3 }
 0x11e   : > { %v2589_v4 = vpack.c.bf16 %v1270_v0, %v1269_v62 }
 0x11f   : > { %v2599_v5 = vpack.c.bf16 %v1366_v1, %v1365_v63 }
 0x120   : > { %2661 = vst [vmem:[%s3244_s7 + $0xa8] sm:$0xff] %v2589_v4  }
 0x121   : > { %2663 = vst [vmem:[%s3244_s7 + $0xb8] sm:$0xff] %v2599_v5  }
 0x123   : > { %v1625_v8 = vpop.f32.mrf.mxu2  ;;  %v1435_v10 = vpop.f32.mrf.mxu0 }
 0x124   : > { %v1721_v9 = vpop.f32.mrf.mxu3  ;;  %v1531_v11 = vpop.f32.mrf.mxu1  ;;  %v1460_v14 = vadd.f32 %v2801_v6, %v1435_v10  ;;  %v1651_v22 = vadd.f32 %v2803_v18, %v1625_v8 }
 0x125   : > { %v1556_v15 = vadd.f32 %v2802_v7, %v1531_v11  ;;  %v1747_v23 = vadd.f32 %v2804_v19, %v1721_v9 }
 0x126   : > { %v2604_v16 = vpack.c.bf16 %v1460_v14, %v1459_v12 }
 0x127   : > { %v2614_v17 = vpack.c.bf16 %v1556_v15, %v1555_v13 }
 0x128   : > { %2664 = vst [vmem:[%s3244_s7 + $0xc0] sm:$0xff] %v2604_v16  }
 0x129   : > { %2666 = vst [vmem:[%s3244_s7 + $0xd0] sm:$0xff] %v2614_v17  }
 0x12b   : > { %v1627_v20 = vpop.f32.mrf.mxu2  ;;  %v1438_v26 = vpop.f32.mrf.mxu0 }
 0x12c   : > { %v1723_v21 = vpop.f32.mrf.mxu3  ;;  %v1652_v24 = vadd.f32 %v2803_v18, %v1627_v20  ;;  %v1534_v27 = vpop.f32.mrf.mxu1  ;;  %v1461_v34 = vadd.f32 %v2801_v6, %v1438_v26 }
 0x12d   : > { %v1748_v25 = vadd.f32 %v2804_v19, %v1723_v21  ;;  %v1557_v35 = vadd.f32 %v2802_v7, %v1534_v27 }
 0x12e   : > { %v2624_v28 = vpack.c.bf16 %v1652_v24, %v1651_v22 }
 0x12f   : > { %v2634_v29 = vpack.c.bf16 %v1748_v25, %v1747_v23 }
 0x130   : > { %2668 = vst [vmem:[%s3244_s7 + $0xe0] sm:$0xff] %v2624_v28  }
 0x131   : > { %2670 = vst [vmem:[%s3244_s7 + $0xf0] sm:$0xff] %v2634_v29  }
 0x133   : > { %v1630_v30 = vpop.f32.mrf.mxu2  ;;  %v1440_v32 = vpop.f32.mrf.mxu0 }
 0x134   : > { %v1726_v31 = vpop.f32.mrf.mxu3  ;;  %v1536_v33 = vpop.f32.mrf.mxu1  ;;  %v1462_v36 = vadd.f32 %v2801_v6, %v1440_v32  ;;  %v1653_v42 = vadd.f32 %v2803_v18, %v1630_v30 }
 0x135   : > { %v1558_v37 = vadd.f32 %v2802_v7, %v1536_v33  ;;  %v1749_v43 = vadd.f32 %v2804_v19, %v1726_v31 }
 0x136   : > { %v2609_v38 = vpack.c.bf16 %v1462_v36, %v1461_v34 }
 0x137   : > { %v2619_v39 = vpack.c.bf16 %v1558_v37, %v1557_v35 }
 0x138   : > { %2665 = vst [vmem:[%s3244_s7 + $0xc8] sm:$0xff] %v2609_v38  }
 0x139   : > { %2667 = vst [vmem:[%s3244_s7 + $0xd8] sm:$0xff] %v2619_v39  }
 0x13b   : > { %v1632_v40 = vpop.f32.mrf.mxu2 }
 0x13c   : > { %v1728_v41 = vpop.f32.mrf.mxu3  ;;  %v1654_v44 = vadd.f32 %v2803_v18, %v1632_v40 }
 0x13d   : > { %v1750_v45 = vadd.f32 %v2804_v19, %v1728_v41 }
 0x13e   : > { %v2629_v46 = vpack.c.bf16 %v1654_v44, %v1653_v42 }
 0x13f   : > { %v2639_v47 = vpack.c.bf16 %v1750_v45, %v1749_v43 }
 0x140   : > { %2669 = vst [vmem:[%s3244_s7 + $0xe8] sm:$0xff] %v2629_v46  }
 0x141   : > { %2671 = vst [vmem:[%s3244_s7 + $0xf8] sm:$0xff] %v2639_v47  }
 0x142   : > { %2892 = shalt.err (!%p2889_p5)
}
 0x143   : > { %s2996_s25 = smov 64   ;;  %s2997_s7 = smov 4  }
 0x144   : > { %2678 = dma.vmem_to_hbm [thread:$0]  (%p3088_p6), %s1777_s30, 4096, %s1779_s4, %s1761_s24, %s2996_s25, %s2996_s25, %s2997_s7  }
 0x145 PF: > { %s3403_s26 = sld [smem:[#allocation12_spill]]  ;;  %p2695_p7 = scmp.ge.s32.totalorder %s2991_s22, 2 }
 0x147   : > { %p2689_p8 = pnand %p2695_p7, %p3094_p10 }
 0x149   : > { %p2690_p9 = pneg %p2689_p8 }
 0x14b   : > { %s1793_s29 = sand.u32 1, %s3403_s26  }
 0x14c   : > { %s1794_s11 = scalar_lea.sflag [#allocation5], %s1793_s29 }
 0x14d   : > { %2946 = dma.done.wait (%p2690_p9), %s1794_s11, 4096  }
 0x14e   : > { %2948 = vsyncadd (%p2690_p9), %s1794_s11, 4294963200  ;;  %s20_s22 = sadd.s32 1, %s2991_s22   ;;  %s3405_s18 = sld [smem:[#allocation13_spill]] }
 0x14f   : > { %p17_p12 = scmp.ge.s32.totalorder %s20_s22, 6   ;;  %s3406_s20 = sld [smem:[#allocation16_spill]] }
 0x150   : > { %s3407_s30 = sld [smem:[#allocation17_spill]]  ;;  %s3408_s12 = smov %s2955_s13 }
 0x151   : > { %s3409_s13 = smov %s2959_s14  ;;  %s3410_s14 = smov %s3139_s1 }
 0x152   : > { %s3411_s15 = smov %s2967_s16  ;;  %s3412_s16 = smov %s2971_s17 }
 0x153   : > { %s3413_s17 = smov %s3136_s9  ;;  %s3414_s19 = smov %s2987_s21 }
 0x154   :  { %19 = sbr.rel (!%p17_p12) target bundleno = 13 (0xd), region = 112 }
 0x156   : > { %s3415_s21 = smov %s3407_s30 }
 0x159   :  { %1800 = vsyncpa [#allocation4], 1 }
 0x15a   :  { %1802 = vsyncpa [#allocation4 + $0x1], 1 }
 0x15b   :  { %1803 = vsyncpa [#allocation7], 1 }
 0x15c   :  { %1804 = vsyncpa [#allocation5], 1 }
 0x15d   :  { %1806 = vsyncpa [#allocation5 + $0x1], 1 }

</bundles_post_ra>
